<compile_context>
chip_gen: v5e
topology: v5e:2x2
jax: 0.10.0
libtpu: 0.0.40
codegen_flags: <defaults>
</compile_context>

<pallas_src>
import jax
import jax.numpy as jnp
from jax.experimental import pallas as pl
from jax.experimental.pallas import tpu as pltpu

LANES = 128


def _rpn_fused_kernel(patches_ref, w_sh_ref, b_sh_ref, w_head_ref, b_head_ref,
                      prob_mask_ref, out_ref):
    # shared = relu(conv3x3(x)) -> im2col matmul (bf16 in, f32 accumulate).
    shared = jnp.dot(patches_ref[...], w_sh_ref[...],
                     preferred_element_type=jnp.float32)
    shared = jnp.maximum(shared + b_sh_ref[...], 0.0)

    # Single fused head matmul. Column layout of `head` (A = anchors/location):
    #   [0, 2A)    class logits
    #   [2A, 4A)   PRE-NEGATED pairwise logit differences -(logit[c]-logit[c^1])
    #   [4A, 8A)   bbox deltas
    #   [8A, 128)  zeros (zero weights / zero bias)
    head = jnp.dot(shared.astype(w_head_ref.dtype), w_head_ref[...],
                   preferred_element_type=jnp.float32) + b_head_ref[...]

    # Per-anchor 2-way softmax == sigmoid of the pairwise logit difference:
    #   softmax([a, b])[0] = 1 / (1 + exp(b - a))
    # The diff columns already carry (b - a), so no in-kernel negate is needed.
    # exp + approx reciprocal both go to the EUP slot.
    probs = pl.reciprocal(1.0 + jnp.exp(head), approx=True)

    # Precomputed prob-column mask (grid-invariant input) -> 1 compare + 1 select
    # per vreg; jnp.where discards any exp overflow on non-prob lanes.
    out = jnp.where(prob_mask_ref[...] > 0.5, probs, head)
    # One unmasked, 128-lane-dense bf16 store: [logits | probs | bbox | zeros].
    out_ref[...] = out.astype(out_ref.dtype)


def _im2col_3x3(x_nhwc, stride):
    """3x3 (pad=1, given stride) patches; columns ordered (kh, kw, cin)."""
    N, H, W, C = x_nhwc.shape
    xpad = jnp.pad(x_nhwc, ((0, 0), (1, 1), (1, 1), (0, 0)))
    Hout = (H + 2 - 3) // stride + 1
    Wout = (W + 2 - 3) // stride + 1
    cols = []
    for kh in range(3):
        for kw in range(3):
            cols.append(xpad[:, kh:kh + Hout * stride:stride,
                             kw:kw + Wout * stride:stride, :])
    patches = jnp.concatenate(cols, axis=-1)            # (N, Hout, Wout, 9*C)
    return patches.reshape(N * Hout * Wout, 9 * C), Hout, Wout


def _tpu_arch():
    """(num_tensorcores, physical VMEM bytes) from the device kind, with safe defaults."""
    kind = ""
    try:
        kind = jax.devices()[0].device_kind.lower()
    except Exception:
        pass
    is_v7 = ("v7" in kind) or ("7x" in kind)
    num_tc = 2 if is_v7 else 1
    vmem_phys = (64 if is_v7 else 128) * 1024 * 1024
    return num_tc, vmem_phys


def _tile_vmem_bytes(tm, kdim, out_w):
    """Rough VMEM footprint of one pipelined step (double-buffered streams)."""
    return (2 * tm * kdim * 2          # patches blocks (bf16, double-buffered)
            + 2 * tm * out_w * 2       # output slab blocks (bf16, double-buffered)
            + 2 * kdim * 512 * 2       # resident shared-conv weights (bf16)
            + 2 * 512 * 4              # shared bias (f32)
            + 2 * 512 * out_w * 2      # fused head weights (bf16)
            + 4 * out_w * 4            # head bias + prob mask (f32)
            + tm * 512 * (4 + 2)       # in-kernel 'shared' f32 + bf16 copy
            + tm * out_w * 4)          # in-kernel 'head' f32


def _pick_row_tile(M, kdim, out_w, num_tc, vmem_phys):
    """Biggest row tile that fits VMEM and still gives >= 2 grid steps per TC."""
    min_steps = 2 * num_tc
    cap = (vmem_phys * 3) // 4
    # On v7x (2 TCs, 64 MiB VMEM) cap tm for deep contraction dims.
    tm_cap = 512 if (num_tc >= 2 and kdim >= 2048) else 1024
    for tm in (1024, 512, 256, 128, 64):
        if tm > tm_cap:
            continue
        if _tile_vmem_bytes(tm, kdim, out_w) + (4 << 20) > cap:
            continue
        if pl.cdiv(M, tm) >= min_steps:
            return tm
    return 64   # tiny M: smallest legal tile maximizes step count


def _vmem_limit_bytes(tm, kdim, out_w, vmem_phys):
    need = _tile_vmem_bytes(tm, kdim, out_w) + (8 << 20)   # headroom for internals
    cap = (vmem_phys * 3) // 4
    return int(min(cap, max(32 << 20, need)))


def rpn_graph_forward(x_nchw, params, anchors_per_location, anchor_stride):
    """Equivalent of rpn_graph.forward for an NCHW input."""
    N, Cin, H, W = x_nchw.shape
    A = anchors_per_location
    two_a = 2 * A
    out_w = max(LANES, pl.cdiv(8 * A, LANES) * LANES)   # lane-dense output width

    x_nhwc = jnp.transpose(x_nchw, (0, 2, 3, 1)).astype(jnp.bfloat16)
    patches, Hout, Wout = _im2col_3x3(x_nhwc, anchor_stride)
    M = N * Hout * Wout
    Kdim = 9 * Cin                       # streamed un-padded; Mosaic pads in VMEM

    num_tc, vmem_phys = _tpu_arch()
    tm = _pick_row_tile(M, Kdim, out_w, num_tc, vmem_phys)
    M_pad = pl.cdiv(M, tm) * tm
    if M_pad != M:
        patches = jnp.pad(patches, ((0, M_pad - M), (0, 0)))

    # Shared conv weights -> (Kdim, 512) matmul form, (kh, kw, cin) ordering.
    w_sh = jnp.transpose(params["w_shared"], (2, 3, 1, 0)).reshape(Kdim, 512)
    w_sh = w_sh.astype(jnp.bfloat16)
    b_sh = params["b_shared"].reshape(1, 512).astype(jnp.float32)

    # Fused head weights: [w_cls | -(pairwise diff of w_cls) | w_bbox | 0].
    w_cls = params["w_cls"].reshape(two_a, 512).T                  # (512, 2A)
    b_cls = params["b_cls"].reshape(two_a).astype(jnp.float32)
    w_bb = params["w_bbox"].reshape(4 * A, 512).T                  # (512, 4A)
    b_bb = params["b_bbox"].reshape(4 * A).astype(jnp.float32)
    swap = jnp.arange(two_a) ^ 1                                   # pair partner
    w_diff = w_cls[:, swap] - w_cls                                # pre-negated diff
    b_diff = b_cls[swap] - b_cls
    w_head = jnp.concatenate(
        [w_cls, w_diff, w_bb, jnp.zeros((512, out_w - 8 * A), jnp.float32)],
        axis=1).astype(jnp.bfloat16)
    b_head = jnp.concatenate(
        [b_cls, b_diff, b_bb, jnp.zeros((out_w - 8 * A,), jnp.float32)]
    ).reshape(1, out_w)

    # Prob-column mask, precomputed once (avoids per-step iota/compares).
    lane = jnp.arange(out_w)
    prob_mask = ((lane >= two_a) & (lane < 2 * two_a)
                 ).astype(jnp.float32).reshape(1, out_w)

    grid_spec = pltpu.PrefetchScalarGridSpec(
        num_scalar_prefetch=0,
        grid=(M_pad // tm,),
        in_specs=[
            pl.BlockSpec((tm, Kdim), lambda i: (i, 0)),       # patches (row-tiled, un-padded K)
            pl.BlockSpec((Kdim, 512), lambda i: (0, 0)),      # w_shared (grid-invariant)
            pl.BlockSpec((1, 512), lambda i: (0, 0)),         # b_shared
            pl.BlockSpec((512, out_w), lambda i: (0, 0)),     # fused head weights
            pl.BlockSpec((1, out_w), lambda i: (0, 0)),       # fused head bias
            pl.BlockSpec((1, out_w), lambda i: (0, 0)),       # prob-column mask
        ],
        out_specs=pl.BlockSpec((tm, out_w), lambda i: (i, 0)),
    )

    out = pl.pallas_call(
        _rpn_fused_kernel,
        grid_spec=grid_spec,
        out_shape=jax.ShapeDtypeStruct((M_pad, out_w), jnp.bfloat16),   # bf16 slab
        compiler_params=pltpu.CompilerParams(
            dimension_semantics=("parallel",),
            vmem_limit_bytes=_vmem_limit_bytes(tm, Kdim, out_w, vmem_phys)),
    )(patches, w_sh, b_sh, w_head, b_head, prob_mask)

    # Glue: drop padded rows, split the slab, reshape exactly like
    # x.permute(0, 2, 3, 1).contiguous().view(N, -1, 2 or 4).
    out = out[:M].astype(jnp.float32)
    rpn_class_logits = out[:, :two_a].reshape(N, Hout * Wout * A, 2)
    rpn_probs = out[:, two_a:2 * two_a].reshape(N, Hout * Wout * A, 2)
    rpn_bbox = out[:, 2 * two_a:2 * two_a + 4 * A].reshape(N, Hout * Wout * A, 4)
    return rpn_class_logits, rpn_probs, rpn_bbox


def rpn_graph_reference(x_nchw, params, anchors_per_location, anchor_stride):
    """Pure-JAX (XLA) reference with the same bf16-in / f32-accumulate precision."""
    A = anchors_per_location
    x = jnp.transpose(x_nchw, (0, 2, 3, 1)).astype(jnp.bfloat16)          # NHWC
    w_sh = jnp.transpose(params["w_shared"], (2, 3, 1, 0)).astype(jnp.bfloat16)
    shared = jax.lax.conv_general_dilated(
        x, w_sh, window_strides=(anchor_stride, anchor_stride),
        padding=((1, 1), (1, 1)),
        dimension_numbers=("NHWC", "HWIO", "NHWC"),
        preferred_element_type=jnp.float32)
    shared = jnp.maximum(shared + params["b_shared"].astype(jnp.float32), 0.0)
    N = shared.shape[0]
    shared2d = shared.reshape(-1, 512).astype(jnp.bfloat16)

    def head(w, b, k):
        wt = w.reshape(k, 512).T.astype(jnp.bfloat16)
        return (jnp.dot(shared2d, wt, preferred_element_type=jnp.float32)
                + b.reshape(1, k).astype(jnp.float32))

    logits = head(params["w_cls"], params["b_cls"], 2 * A).reshape(N, -1, 2)
    probs = jax.nn.softmax(logits, axis=-1)
    bbox = head(params["w_bbox"], params["b_bbox"], 4 * A).reshape(N, -1, 4)
    return logits, probs, bbox


def init_params(key, input_dims, anchors_per_location):
    """Deterministic synthetic parameters matching rpn_graph.__init__ shapes."""
    A = anchors_per_location
    ks = jax.random.split(key, 6)
    scale = 0.05
    return {
        "w_shared": scale * jax.random.normal(ks[0], (512, input_dims, 3, 3), jnp.float32),
        "b_shared": scale * jax.random.normal(ks[1], (512,), jnp.float32),
        "w_cls":    scale * jax.random.normal(ks[2], (2 * A, 512, 1, 1), jnp.float32),
        "b_cls":    scale * jax.random.normal(ks[3], (2 * A,), jnp.float32),
        "w_bbox":   scale * jax.random.normal(ks[4], (4 * A, 512, 1, 1), jnp.float32),
        "b_bbox":   scale * jax.random.normal(ks[5], (4 * A,), jnp.float32),
    }


if __name__ == "__main__":
    key = jax.random.PRNGKey(0)
    k_x, k_p = jax.random.split(key)

    N, Cin, H, W = 2, 4, 16, 16
    anchors_per_location = 3
    anchor_stride = 1

    x = jax.random.normal(k_x, (N, Cin, H, W), jnp.float32)   # NCHW, like PyTorch
    params = init_params(k_p, Cin, anchors_per_location)

    logits, probs, bbox = rpn_graph_forward(x, params, anchors_per_location,
                                            anchor_stride)
    jax.block_until_ready((logits, probs, bbox))

    assert logits.shape == (N, H * W * anchors_per_location, 2)
    assert probs.shape == (N, H * W * anchors_per_location, 2)
    assert bbox.shape == (N, H * W * anchors_per_location, 4)
    # softmax rows must sum to ~1 (approx reciprocal + bf16 slab => loose tolerance)
    assert bool(jnp.allclose(probs.sum(-1), 1.0, atol=2e-2))

    # compare against a pure-JAX reference with matching mixed precision
    ref_logits, ref_probs, ref_bbox = rpn_graph_reference(
        x, params, anchors_per_location, anchor_stride)
    assert bool(jnp.allclose(logits, ref_logits, atol=3e-2))
    assert bool(jnp.allclose(probs, ref_probs, atol=3e-2))
    assert bool(jnp.allclose(bbox, ref_bbox, atol=3e-2))

    print("KERNEL_OK")
</pallas_src>

<mosaic_0001>
module attributes {stable_mosaic.version = 11 : i64} {
  func.func @_rpn_fused_kernel(%arg0: i32, %arg1: memref<256x36xbf16, #tpu.memory_space<vmem>>, %arg2: memref<36x512xbf16, #tpu.memory_space<vmem>>, %arg3: memref<1x512xf32, #tpu.memory_space<vmem>>, %arg4: memref<512x128xbf16, #tpu.memory_space<vmem>>, %arg5: memref<1x128xf32, #tpu.memory_space<vmem>>, %arg6: memref<1x128xf32, #tpu.memory_space<vmem>>, %arg7: memref<256x128xbf16, #tpu.memory_space<vmem>>) attributes {dimension_semantics = [#tpu.dimension_semantics<parallel>], iteration_bounds = array<i64: 2>, scalar_prefetch = 0 : i64, scratch_operands = 0 : i64, tpu.core_type = #tpu.core_type<tc>, window_params = [{transform_indices = @transform_0, window_bounds = array<i64: 256, 36>}, {pipeline_mode = #tpu.pipeline_mode<synchronous>, transform_indices = @transform_1, window_bounds = array<i64: 36, 512>}, {pipeline_mode = #tpu.pipeline_mode<synchronous>, transform_indices = @transform_2, window_bounds = array<i64: 1, 512>}, {pipeline_mode = #tpu.pipeline_mode<synchronous>, transform_indices = @transform_3, window_bounds = array<i64: 512, 128>}, {pipeline_mode = #tpu.pipeline_mode<synchronous>, transform_indices = @transform_4, window_bounds = array<i64: 1, 128>}, {pipeline_mode = #tpu.pipeline_mode<synchronous>, transform_indices = @transform_5, window_bounds = array<i64: 1, 128>}, {transform_indices = @transform_6, window_bounds = array<i64: 256, 128>}]} {
    %c0 = arith.constant 0 : index
    %c0_0 = arith.constant 0 : index
    %0 = vector.load %arg1[%c0, %c0_0] : memref<256x36xbf16, #tpu.memory_space<vmem>>, vector<256x36xbf16>
    %c0_1 = arith.constant 0 : index
    %c0_2 = arith.constant 0 : index
    %1 = vector.load %arg2[%c0_1, %c0_2] : memref<36x512xbf16, #tpu.memory_space<vmem>>, vector<36x512xbf16>
    %cst = arith.constant dense<0.000000e+00> : vector<256x512xf32>
    %2 = tpu.matmul %0, %1, %cst {dimension_numbers = #tpu.dot_dimension_numbers<[1], [0], [0], [1], [0, 0, 1, 1], [], []>} : vector<256x36xbf16>, vector<36x512xbf16>, vector<256x512xf32> -> vector<256x512xf32>
    %c0_3 = arith.constant 0 : index
    %c0_4 = arith.constant 0 : index
    %3 = vector.load %arg3[%c0_3, %c0_4] : memref<1x512xf32, #tpu.memory_space<vmem>>, vector<1x512xf32>
    %4 = vector.broadcast %3 : vector<1x512xf32> to vector<256x512xf32>
    %5 = arith.addf %2, %4 : vector<256x512xf32>
    %cst_5 = arith.constant 0.000000e+00 : f32
    %6 = vector.broadcast %cst_5 : f32 to vector<256x512xf32>
    %7 = arith.maximumf %5, %6 : vector<256x512xf32>
    %8 = arith.truncf %7 : vector<256x512xf32> to vector<256x512xbf16>
    %c0_6 = arith.constant 0 : index
    %c0_7 = arith.constant 0 : index
    %9 = vector.load %arg4[%c0_6, %c0_7] : memref<512x128xbf16, #tpu.memory_space<vmem>>, vector<512x128xbf16>
    %cst_8 = arith.constant dense<0.000000e+00> : vector<256x128xf32>
    %10 = tpu.matmul %8, %9, %cst_8 {dimension_numbers = #tpu.dot_dimension_numbers<[1], [0], [0], [1], [0, 0, 1, 1], [], []>} : vector<256x512xbf16>, vector<512x128xbf16>, vector<256x128xf32> -> vector<256x128xf32>
    %c0_9 = arith.constant 0 : index
    %c0_10 = arith.constant 0 : index
    %11 = vector.load %arg5[%c0_9, %c0_10] : memref<1x128xf32, #tpu.memory_space<vmem>>, vector<1x128xf32>
    %12 = vector.broadcast %11 : vector<1x128xf32> to vector<256x128xf32>
    %13 = arith.addf %10, %12 : vector<256x128xf32>
    %14 = math.exp %13 : vector<256x128xf32>
    %cst_11 = arith.constant 1.000000e+00 : f32
    %15 = vector.broadcast %cst_11 : f32 to vector<256x128xf32>
    %16 = arith.addf %15, %14 : vector<256x128xf32>
    %17 = tpu.reciprocal %16 {approx = true} : vector<256x128xf32> -> vector<256x128xf32>
    %c0_12 = arith.constant 0 : index
    %c0_13 = arith.constant 0 : index
    %18 = vector.load %arg6[%c0_12, %c0_13] : memref<1x128xf32, #tpu.memory_space<vmem>>, vector<1x128xf32>
    %cst_14 = arith.constant 5.000000e-01 : f32
    %19 = vector.broadcast %cst_14 : f32 to vector<1x128xf32>
    %20 = arith.cmpf ogt, %18, %19 : vector<1x128xf32>
    %21 = vector.shape_cast %20 : vector<1x128xi1> to vector<1x128xi1>
    %22 = vector.broadcast %21 : vector<1x128xi1> to vector<256x128xi1>
    %23 = arith.select %22, %17, %13 : vector<256x128xi1>, vector<256x128xf32>
    %24 = arith.truncf %23 : vector<256x128xf32> to vector<256x128xbf16>
    %c0_15 = arith.constant 0 : index
    %c0_16 = arith.constant 0 : index
    %25 = vector.load %arg7[%c0_15, %c0_16] : memref<256x128xbf16, #tpu.memory_space<vmem>>, vector<256x128xbf16>
    tpu.vector_store %arg7[%c0_15, %c0_16], %24 {strides = array<i32>} : memref<256x128xbf16, #tpu.memory_space<vmem>>, vector<256x128xbf16>,
    return
  }
  func.func @transform_0(%arg0: i32) -> (i32, i32) {
    %c0_i32 = arith.constant 0 : i32
    %c0_i32_0 = arith.constant 0 : i32
    return %arg0, %c0_i32 : i32, i32
  }
  func.func @transform_1(%arg0: i32) -> (i32, i32) {
    %c0_i32 = arith.constant 0 : i32
    %c0_i32_0 = arith.constant 0 : i32
    %c0_i32_1 = arith.constant 0 : i32
    return %c0_i32, %c0_i32_0 : i32, i32
  }
  func.func @transform_2(%arg0: i32) -> (i32, i32) {
    %c0_i32 = arith.constant 0 : i32
    %c0_i32_0 = arith.constant 0 : i32
    %c0_i32_1 = arith.constant 0 : i32
    return %c0_i32, %c0_i32_0 : i32, i32
  }
  func.func @transform_3(%arg0: i32) -> (i32, i32) {
    %c0_i32 = arith.constant 0 : i32
    %c0_i32_0 = arith.constant 0 : i32
    %c0_i32_1 = arith.constant 0 : i32
    return %c0_i32, %c0_i32_0 : i32, i32
  }
  func.func @transform_4(%arg0: i32) -> (i32, i32) {
    %c0_i32 = arith.constant 0 : i32
    %c0_i32_0 = arith.constant 0 : i32
    %c0_i32_1 = arith.constant 0 : i32
    return %c0_i32, %c0_i32_0 : i32, i32
  }
  func.func @transform_5(%arg0: i32) -> (i32, i32) {
    %c0_i32 = arith.constant 0 : i32
    %c0_i32_0 = arith.constant 0 : i32
    %c0_i32_1 = arith.constant 0 : i32
    return %c0_i32, %c0_i32_0 : i32, i32
  }
  func.func @transform_6(%arg0: i32) -> (i32, i32) {
    %c0_i32 = arith.constant 0 : i32
    %c0_i32_0 = arith.constant 0 : i32
    return %arg0, %c0_i32 : i32, i32
  }
}

</mosaic_0001>

<bundles_post_ra>
// kernel: tpu_custom_call.1
= control target key start
LH: loop header
LB: loop body
LE: loop exit
PB: predicated region body
PF: predicated region fallthrough
CT: control target
= control target key end

     0   :  { %11 = vsyncpa [#allocation3], 0  ;;  %s3581_s0 = inlined_call_operand.vmem [shape: bf16[512,36], index: 0, kind: input, shape index: {}]   ;;  %s3582_s1 = inlined_call_operand.vmem [shape: bf16[36,512], index: 1, kind: input, shape index: {}]   ;;  %s3583_s2 = inlined_call_operand.hbm [shape: f32[1,512], index: 2, kind: input, shape index: {}]   ;;  %s3584_s3 = inlined_call_operand.vmem [shape: bf16[512,128], index: 3, kind: input, shape index: {}]   ;;  %s3585_s4 = inlined_call_operand.vmem [shape: f32[1,128], index: 4, kind: input, shape index: {}]   ;;  %s3586_s5 = inlined_call_operand.vmem [shape: f32[1,128], index: 5, kind: input, shape index: {}]   ;;  %s3587_s6 = inlined_call_operand.hbm [shape: bf16[512,128], index: 6, kind: output, shape index: {}]  }
   0x1   :  { %12 = vsyncpa [#allocation4], 0 }
   0x2   :  { %14 = vsyncpa [#allocation4 + $0x1], 0  ;;  %s2770_s21 = smov 0   ;;  %s2772_s22 = smov 0  }
   0x3   :  { %s2774_s23 = smov 0   ;;  %s2776_s24 = smov 0  }
   0x4 LB: > { %s2791_s25 = sadd.s32 4294967295, %s2729_s24   ;;  %s1996_s26 = sadd.s32 4294967294, %s2729_s24   ;;  %s2729_s24 = sphi %s2776_s24, %s3595_s24   ;;  %s2725_s23 = sphi %s2774_s23, %s3594_s23   ;;  %s2721_s22 = sphi %s2772_s22, %s3593_s22   ;;  %s2717_s21 = sphi %s2770_s21, %s3592_s21  }
   0x5   : > { %s2795_s27 = sadd.s32 1, %s2729_s24   ;;  %s158_s28 = sadd.s32 1, %s2725_s23 }
   0x6   : > { %s155_s29 = ssub.s32 %s2729_s24, %s2795_s27  ;;  %p168_p0 = scmp.ne.s32.totalorder %s2725_s23, %s2721_s22 }
   0x7   : > { %p156_p1 = scmp.eq.s32.totalorder %s155_s29, 0  ;;  %p169_p2 = scmp.eq.s32.totalorder %s2791_s25, 1 }
   0x8   : > { %p174_p3 = scmp.ne.s32.totalorder %s2721_s22, %s2717_s21  ;;  %p175_p4 = scmp.eq.s32.totalorder %s1996_s26, 1 }
   0x9   : > { %s2806_s30 = scalar_select %p156_p1, %s2725_s23, %s158_s28  }
   0xa   : > { %p2808_p5 = por %p169_p2, %p168_p0  ;;  %p2812_p6 = por %p175_p4, %p174_p3 }
   0xb   : > { %p1997_p7 = scmp.ge.s32.totalorder %s2729_s24, 1  ;;  %p182_p8 = scmp.lt.s32.totalorder %s2729_s24, 3 }
   0xc   : > { %p2464_p9 = scmp.eq.s32.totalorder %s2791_s25, 0  ;;  %s197_s11 = sshll.u32 %s3583_s2, 4  ;;  %s198_s11 = int_to_ptr.hbm [resolvable:$true] %s197_s11 }
   0xd   : > { %p183_p10 = pnand %p1997_p7, %p182_p8  ;;  %s2731_s12 = smov [#allocation2]  }
   0xe   : > { %s199_s13 = sshll.u32 %s2731_s12, 4  ;;  %s200_s13 = int_to_ptr.vmem [resolvable:$true] %s199_s13 }
   0xf   : > { %p2456_p11 = pneg %p183_p10  ;;  %230 = sbr.rel (%p183_p10) target bundleno = 704 (0x2c0), region = 44 }
  0x11   : > { %p2457_p12 = pnand %p2464_p9, %p2456_p11 }
  0x13   : > { %2459 = dma.hbm_to_vmem [thread:$0]  (!%p2457_p12), %s198_s11, 64, %s200_s13, [#allocation3]  }
  0x14   : > { %2708 = dma.done.wait (%p2464_p9), [#allocation3], 64  }
  0x15   : > { %2710 = vsyncadd (%p2464_p9), [#allocation3], 4294967232  ;;  %s2003_s14 = sshll.u32 %s2791_s25, 5  ;;  %v309_v0 = vld [vmem:[%s3582_s1 + $0x40] sm:$0x33]  ;;  %vm500_vm0 = vcmask 1041408  }
  0x16   : > { %p262_p13 = scmp.lt.s32.totalorder %s2003_s14, 63  ;;  %v310_v1 = vld [vmem:[%s3582_s1 + $0x48] sm:$0x33]  ;;  %v427_v2 = vunpack.c.l.b16 %v309_v0  ;;  %v428_v3 = vunpack.c.h.b16 %v309_v0  ;;  %v2087_v6 = vld [vmem:[%s3582_s1 + $0x20] sm:$0xf]  ;;  %v2345_v38 = vld [vmem:[%s3584_s3 + $0xb8] sm:$0xff] }
  0x17   : > { %v429_v4 = vunpack.c.l.b16 %v310_v1  ;;  %v430_v5 = vunpack.c.h.b16 %v310_v1  ;;  %v2320_v7 = vld [vmem:[%s3582_s1 + $0x2c] sm:$0xf0]  ;;  %v2318_v12 = vld [vmem:[%s3582_s1 + $0x24] sm:$0xf]  ;;  %v2089_v13 = vld [vmem:[%s3582_s1 + $0x30] sm:$0xf0] }
  0x18   : > { %s3597_s14 = smov (!%p262_p13, %s2003_s14), 63  ;;  %v439_v8 = vpack.c.b16 %v427_v2, %v427_v2  ;;  %v440_v9 = vpack.c.b16 %v428_v3, %v428_v3  ;;  %v2095_v14 = vld [vmem:[%s3582_s1 + $0x28] sm:$0xf]  ;;  %v2321_v15 = vld [vmem:[%s3582_s1 + $0x34] sm:$0xf0]  ;;  %v2088_v22 = vor.u32 %v2320_v7, %v2087_v6  ;;  %v2092_v23 = vor.u32 %v2318_v12, %v2089_v13  ;;  %v2344_v43 = vld [vmem:[%s3584_s3 + $0xb0] sm:$0xff] }
  0x19   : > { %v441_v10 = vpack.c.b16 %v429_v4, %v429_v4  ;;  %v442_v11 = vpack.c.b16 %v430_v5, %v430_v5  ;;  %v2319_v16 = vld [vmem:[%s3582_s1 + $0x2c] sm:$0xf]  ;;  %v2097_v17 = vld [vmem:[%s3582_s1 + $0x38] sm:$0xf0]  ;;  %v2071_v24 = vld [vmem:[%s3582_s1] sm:$0xf]  ;;  %v2096_v26 = vor.u32 %v2321_v15, %v2095_v14 }
  0x1a   : > { %v502_v18 = vsel %vm500_vm0, %v439_v8, 0  ;;  %v505_v19 = vsel %vm500_vm0, %v440_v9, 0  ;;  %v2316_v25 = vld [vmem:[%s3582_s1 + $0xc] sm:$0xf0]  ;;  %s2004_s10 = sshll.u32 %s3597_s14, 2  ;;  %v2100_v27 = vor.u32 %v2319_v16, %v2097_v17  ;;  %v2329_v39 = vld [vmem:[%s3584_s3 + $0x38] sm:$0xff] }
  0x1b   : > { %v508_v20 = vsel %vm500_vm0, %v441_v10, 0  ;;  %v511_v21 = vsel %vm500_vm0, %v442_v11, 0  ;;  %518 = vmatpush.bf16.msra.mxu0 %v502_v18  ;;  %607 = vmatpush.bf16.msra.mxu1 %v505_v19  ;;  %v2314_v28 = vld [vmem:[%s3582_s1 + $0x4] sm:$0xf]  ;;  %v2073_v29 = vld [vmem:[%s3582_s1 + $0x10] sm:$0xf0]  ;;  %v2072_v34 = vor.u32 %v2316_v25, %v2071_v24  ;;  %s2887_s11 = scalar_lea.vmem %s3581_s0, %s2004_s10 }
  0x1c   : > { %696 = vmatpush.bf16.msra.mxu2 %v508_v20  ;;  %785 = vmatpush.bf16.msra.mxu3 %v511_v21  ;;  %v2079_v30 = vld [vmem:[%s3582_s1 + $0x8] sm:$0xf]  ;;  %v2317_v31 = vld [vmem:[%s3582_s1 + $0x14] sm:$0xf0]  ;;  %v2315_v32 = vld [vmem:[%s3582_s1 + $0xc] sm:$0xf]  ;;  %v2076_v35 = vor.u32 %v2314_v28, %v2073_v29 }
  0x1d   : > { %v2081_v33 = vld [vmem:[%s3582_s1 + $0x18] sm:$0xf0]  ;;  %v2080_v36 = vor.u32 %v2317_v31, %v2079_v30  ;;  %v2298_v40 = vld [vmem:[%s2887_s11] sm:$0xff]  ;;  %vm451_vm1 = vcmask 293888   ;;  %v2328_v44 = vld [vmem:[%s3584_s3 + $0x30] sm:$0xff]  ;;  %s258_s28 = sand.u32 1, %s2721_s22  }
  0x1e   : > { %v2084_v37 = vor.u32 %v2315_v32, %v2081_v33  ;;  %v2353_v41 = vld [vmem:[%s3584_s3 + $0xf8] sm:$0xff]  ;;  %v2352_v45 = vld [vmem:[%s3584_s3 + $0xf0] sm:$0xff]  ;;  %v2299_v47 = vld [vmem:[%s2887_s11 + $0x8] sm:$0xff]  ;;  %s2002_s29 = sshll.u32 %s258_s28, 7  ;;  %s2354_s15 = sshll.u32 %s2791_s25, 7 }
  0x1f   : > { %519 = vmatpush.bf16.msra.mxu0 %v2088_v22  ;;  %608 = vmatpush.bf16.msra.mxu1 %v2092_v23  ;;  %v2337_v42 = vld [vmem:[%s3584_s3 + $0x78] sm:$0xff]  ;;  %v2336_v46 = vld [vmem:[%s3584_s3 + $0x70] sm:$0xff]  ;;  %v2343_v49 = vld [vmem:[%s3584_s3 + $0xa8] sm:$0xff]  ;;  %s3404_s9 = scalar_lea.vmem [#allocation5], %s2002_s29  ;;  %s1918_s17 = scalar_lea.hbm %s3587_s6, %s2354_s15 }
  0x20   : > { %697 = vmatpush.bf16.msra.mxu2 %v2096_v26  ;;  %786 = vmatpush.bf16.msra.mxu3 %v2100_v27  ;;  %v2300_v48 = vld [vmem:[%s2887_s11 + $0x10] sm:$0xff]  ;;  %v2327_v50 = vld [vmem:[%s3584_s3 + $0x28] sm:$0xff]  ;;  %v2301_v53 = vld [vmem:[%s2887_s11 + $0x18] sm:$0xff]  ;;  %s1919_s18 = sshll.u32 %s3404_s9, 4  ;;  %s1921_s19 = sshll.u32 %s1918_s17, 4  ;;  %s1920_s18 = int_to_ptr.vmem [resolvable:$true] %s1919_s18  ;;  %s1922_s19 = int_to_ptr.hbm [resolvable:$true] %s1921_s19 }
  0x21   : > { %v2351_v51 = vld [vmem:[%s3584_s3 + $0xe8] sm:$0xff]  ;;  %v2302_v54 = vld [vmem:[%s2887_s11 + $0x20] sm:$0xff]  ;;  %v2304_v60 = vld [vmem:[%s2887_s11 + $0x30] sm:$0xff]  ;;  %s1907_s25 = scalar_lea.sflag [#allocation4], %s258_s28  ;;  %s2683_s29 = scalar_lea.hbm %s3587_s6, 256 }
  0x22   : > { %v2335_v52 = vld [vmem:[%s3584_s3 + $0x68] sm:$0xff]  ;;  %v2342_v55 = vld [vmem:[%s3584_s3 + $0xa0] sm:$0xff]  ;;  %v2341_v61 = vld [vmem:[%s3584_s3 + $0x98] sm:$0xff] }
  0x23   : > { %520 = vmatpush.bf16.msra.mxu0 %v2072_v34  ;;  %609 = vmatpush.bf16.msra.mxu1 %v2076_v35  ;;  %v2326_v56 = vld [vmem:[%s3584_s3 + $0x20] sm:$0xff]  ;;  %v2303_v59 = vld [vmem:[%s2887_s11 + $0x28] sm:$0xff]  ;;  %v2325_v62 = vld [vmem:[%s3584_s3 + $0x18] sm:$0xff] }
  0x24   : > { %698 = vmatpush.bf16.msra.mxu2 %v2080_v36  ;;  %787 = vmatpush.bf16.msra.mxu3 %v2084_v37  ;;  %v2350_v57 = vld [vmem:[%s3584_s3 + $0xe0] sm:$0xff]  ;;  %v2349_v63 = vld [vmem:[%s3584_s3 + $0xd8] sm:$0xff]  ;;  %v2340_v8 = vld [vmem:[%s3584_s3 + $0x90] sm:$0xff] }
  0x25   : > { %v2334_v58 = vld [vmem:[%s3584_s3 + $0x60] sm:$0xff]  ;;  %v2333_v0 = vld [vmem:[%s3584_s3 + $0x58] sm:$0xff]  ;;  %v2324_v9 = vld [vmem:[%s3584_s3 + $0x10] sm:$0xff] }
  0x26   : > { %2101 = vmatmul.msk.bf16.vlgmr.msra.gmra.mxu0 %vm451_vm1, %v2298_v40  ;;  %2117 = vmatmul.msk.bf16.vlgmr.msra.gmra.mxu1 %vm451_vm1, %v2298_v40  ;;  %v2305_v1 = vld [vmem:[%s2887_s11 + $0x38] sm:$0xff]  ;;  %v2306_v2 = vld [vmem:[%s2887_s11 + $0x40] sm:$0xff]  ;;  %v2348_v10 = vld [vmem:[%s3584_s3 + $0xd0] sm:$0xff] }
  0x27   : > { %1321 = vmatpush.bf16.msrb.mxu0 %v2329_v39  ;;  %2133 = vmatmul.msk.bf16.vlgmr.msra.gmra.mxu2 %vm451_vm1, %v2298_v40  ;;  %v311_v3 = vld [vmem:[#allocation2] sm:$0xf]  ;;  %v2332_v21 = vld [vmem:[%s3584_s3 + $0x50] sm:$0xff]  ;;  %v2307_v32 = vld [vmem:[%s2887_s11 + $0x48] sm:$0xff] }
  0x28   : > { %1499 = vmatpush.bf16.msrb.mxu2 %v2345_v38  ;;  %2149 = vmatmul.msk.bf16.vlgmr.msra.gmra.mxu3 %vm451_vm1, %v2298_v40  ;;  %v2990_v6 = vperm.slane %v311_v3, 0  ;;  %v2992_v7 = vperm.slane %v311_v3, 1  ;;  %v3011_v19 = vperm.slane %v311_v3, 2  ;;  %v3013_v20 = vperm.slane %v311_v3, 3 }
  0x29   : > { %1588 = vmatpush.bf16.msrb.mxu3 %v2353_v41  ;;  %1410 = vmatpush.bf16.msrb.mxu1 %v2337_v42 }
  0x2b   : > { %1322 = vmatpush.bf16.msrb.mxu0 %v2328_v44 }
  0x2c   : > { %1500 = vmatpush.bf16.msrb.mxu2 %v2344_v43 }
  0x2d   : > { %1589 = vmatpush.bf16.msrb.mxu3 %v2352_v45  ;;  %1411 = vmatpush.bf16.msrb.mxu1 %v2336_v46 }
  0x2f   : > { %1323 = vmatpush.bf16.msrb.mxu0 %v2327_v50 }
  0x30   : > { %1501 = vmatpush.bf16.msrb.mxu2 %v2343_v49 }
  0x31   : > { %1590 = vmatpush.bf16.msrb.mxu3 %v2351_v51  ;;  %1412 = vmatpush.bf16.msrb.mxu1 %v2335_v52 }
  0x33   : > { %1324 = vmatpush.bf16.msrb.mxu0 %v2326_v56 }
  0x34   : > { %1502 = vmatpush.bf16.msrb.mxu2 %v2342_v55 }
  0x35   : > { %1591 = vmatpush.bf16.msrb.mxu3 %v2350_v57  ;;  %1413 = vmatpush.bf16.msrb.mxu1 %v2334_v58 }
  0x36   : > { %2102 = vmatmul.msk.bf16.gmra.mxu0 %vm451_vm1, %v2299_v47  ;;  %2118 = vmatmul.msk.bf16.gmra.mxu1 %vm451_vm1, %v2299_v47 }
  0x37   : > { %2134 = vmatmul.msk.bf16.gmra.mxu2 %vm451_vm1, %v2299_v47  ;;  %1325 = vmatpush.bf16.msrb.mxu0 %v2325_v62 }
  0x38   : > { %2150 = vmatmul.msk.bf16.gmra.mxu3 %vm451_vm1, %v2299_v47  ;;  %1503 = vmatpush.bf16.msrb.mxu2 %v2341_v61  ;;  %v2308_v61 = vld [vmem:[%s2887_s11 + $0x50] sm:$0xff] }
  0x39   : > { %1592 = vmatpush.bf16.msrb.mxu3 %v2349_v63  ;;  %1414 = vmatpush.bf16.msrb.mxu1 %v2333_v0 }
  0x3b   : > { %1326 = vmatpush.bf16.msrb.mxu0 %v2324_v9  ;;  %v2323_v9 = vld [vmem:[%s3584_s3 + $0x8] sm:$0xff] }
  0x3c   : > { %1504 = vmatpush.bf16.msrb.mxu2 %v2340_v8  ;;  %v2339_v8 = vld [vmem:[%s3584_s3 + $0x88] sm:$0xff] }
  0x3d   : > { %1593 = vmatpush.bf16.msrb.mxu3 %v2348_v10  ;;  %1415 = vmatpush.bf16.msrb.mxu1 %v2332_v21  ;;  %v2347_v10 = vld [vmem:[%s3584_s3 + $0xc8] sm:$0xff] }
  0x3f   : > { %1327 = vmatpush.bf16.msrb.mxu0 %v2323_v9 }
  0x40   : > { %1505 = vmatpush.bf16.msrb.mxu2 %v2339_v8 }
  0x41   : > { %1594 = vmatpush.bf16.msrb.mxu3 %v2347_v10 }
  0x46   : > { %2103 = vmatmul.msk.bf16.gmra.mxu0 %vm451_vm1, %v2300_v48  ;;  %2119 = vmatmul.msk.bf16.gmra.mxu1 %vm451_vm1, %v2300_v48 }
  0x47   : > { %2135 = vmatmul.msk.bf16.gmra.mxu2 %vm451_vm1, %v2300_v48 }
  0x48   : > { %2151 = vmatmul.msk.bf16.gmra.mxu3 %vm451_vm1, %v2300_v48 }
  0x56   : > { %2104 = vmatmul.msk.bf16.gmra.mxu0 %vm451_vm1, %v2301_v53  ;;  %2120 = vmatmul.msk.bf16.gmra.mxu1 %vm451_vm1, %v2301_v53 }
  0x57   : > { %2136 = vmatmul.msk.bf16.gmra.mxu2 %vm451_vm1, %v2301_v53 }
  0x58   : > { %2152 = vmatmul.msk.bf16.gmra.mxu3 %vm451_vm1, %v2301_v53 }
  0x66   : > { %2105 = vmatmul.msk.bf16.gmra.mxu0 %vm451_vm1, %v2302_v54  ;;  %2121 = vmatmul.msk.bf16.gmra.mxu1 %vm451_vm1, %v2302_v54 }
  0x67   : > { %2137 = vmatmul.msk.bf16.gmra.mxu2 %vm451_vm1, %v2302_v54 }
  0x68   : > { %2153 = vmatmul.msk.bf16.gmra.mxu3 %vm451_vm1, %v2302_v54 }
  0x76   : > { %2106 = vmatmul.msk.bf16.gmra.mxu0 %vm451_vm1, %v2303_v59  ;;  %2122 = vmatmul.msk.bf16.gmra.mxu1 %vm451_vm1, %v2303_v59 }
  0x77   : > { %2138 = vmatmul.msk.bf16.gmra.mxu2 %vm451_vm1, %v2303_v59 }
  0x78   : > { %2154 = vmatmul.msk.bf16.gmra.mxu3 %vm451_vm1, %v2303_v59 }
  0x86   : > { %2107 = vmatmul.msk.bf16.gmra.mxu0 %vm451_vm1, %v2304_v60  ;;  %2123 = vmatmul.msk.bf16.gmra.mxu1 %vm451_vm1, %v2304_v60 }
  0x87   : > { %2139 = vmatmul.msk.bf16.gmra.mxu2 %vm451_vm1, %v2304_v60 }
  0x88   : > { %2155 = vmatmul.msk.bf16.gmra.mxu3 %vm451_vm1, %v2304_v60 }
  0x96   : > { %2108 = vmatmul.msk.bf16.gmra.mxu0 %vm451_vm1, %v2305_v1  ;;  %2124 = vmatmul.msk.bf16.gmra.mxu1 %vm451_vm1, %v2305_v1 }
  0x97   : > { %2140 = vmatmul.msk.bf16.gmra.mxu2 %vm451_vm1, %v2305_v1 }
  0x98   : > { %2156 = vmatmul.msk.bf16.gmra.mxu3 %vm451_vm1, %v2305_v1 }
  0xa3   : > { %v522_v4 = vpop.f32.mrf.mxu0  ;;  %v611_v5 = vpop.f32.mrf.mxu1 }
  0xa4   : > { %v523_v11 = vadd.f32 %v522_v4, %v2990_v6  ;;  %v612_v12 = vadd.f32 %v611_v5, %v2992_v7 }
  0xa6   : > { %2109 = vmatmul.msk.bf16.gmra.mxu0 %vm451_vm1, %v2306_v2  ;;  %2125 = vmatmul.msk.bf16.gmra.mxu1 %vm451_vm1, %v2306_v2  ;;  %v869_v22 = vmax.f32 %v523_v11, 0.0  ;;  %v870_v23 = vmax.f32 %v612_v12, 0.0 }
  0xa7   : > { %2141 = vmatmul.msk.bf16.gmra.mxu2 %vm451_vm1, %v2306_v2 }
  0xa8   : > { %2157 = vmatmul.msk.bf16.gmra.mxu3 %vm451_vm1, %v2306_v2 }
  0xaa   : > { %v700_v13 = vpop.f32.mrf.mxu2 }
  0xab   : > { %v789_v14 = vpop.f32.mrf.mxu3  ;;  %v524_v15 = vpop.f32.mrf.mxu0  ;;  %v701_v28 = vadd.f32 %v700_v13, %v3011_v19 }
  0xac   : > { %v613_v16 = vpop.f32.mrf.mxu1  ;;  %v525_v17 = vadd.f32 %v524_v15, %v2990_v6  ;;  %v790_v29 = vadd.f32 %v789_v14, %v3013_v20 }
  0xad   : > { %v614_v18 = vadd.f32 %v613_v16, %v2992_v7  ;;  %v871_v37 = vmax.f32 %v701_v28, 0.0 }
  0xae   : > { %v873_v24 = vmax.f32 %v525_v17, 0.0  ;;  %v872_v38 = vmax.f32 %v790_v29, 0.0 }
  0xaf   : > { %v874_v25 = vmax.f32 %v614_v18, 0.0 }
  0xb0   : > { %v3018_v26 = vpack.c.bf16 %v873_v24, %v869_v22 }
  0xb1   : > { %v3020_v27 = vpack.c.bf16 %v874_v25, %v870_v23  ;;  %v2331_v23 = vld [vmem:[%s3584_s3 + $0x48] sm:$0xff] }
  0xb2   : > { %v702_v30 = vpop.f32.mrf.mxu2  ;;  %1416 = vmatpush.bf16.msrb.mxu1 %v2331_v23 }
  0xb3   : > { %v791_v31 = vpop.f32.mrf.mxu3  ;;  %v703_v33 = vadd.f32 %v702_v30, %v3011_v19  ;;  %v527_v35 = vpop.f32.mrf.mxu0 }
  0xb4   : > { %v792_v34 = vadd.f32 %v791_v31, %v3013_v20  ;;  %v616_v36 = vpop.f32.mrf.mxu1  ;;  %v528_v43 = vadd.f32 %v527_v35, %v2990_v6 }
  0xb5   : > { %v875_v39 = vmax.f32 %v703_v33, 0.0  ;;  %v617_v44 = vadd.f32 %v616_v36, %v2992_v7  ;;  %v2309_v36 = vld [vmem:[%s2887_s11 + $0x58] sm:$0xff] }
  0xb6   : > { %v876_v40 = vmax.f32 %v792_v34, 0.0  ;;  %2110 = vmatmul.msk.bf16.gmra.mxu0 %vm451_vm1, %v2307_v32  ;;  %2126 = vmatmul.msk.bf16.gmra.mxu1 %vm451_vm1, %v2307_v32  ;;  %v877_v51 = vmax.f32 %v528_v43, 0.0 }
  0xb7   : > { %v3029_v41 = vpack.c.bf16 %v875_v39, %v871_v37  ;;  %2142 = vmatmul.msk.bf16.gmra.mxu2 %vm451_vm1, %v2307_v32  ;;  %v878_v52 = vmax.f32 %v617_v44, 0.0 }
  0xb8   : > { %v3031_v42 = vpack.c.bf16 %v876_v40, %v872_v38  ;;  %2158 = vmatmul.msk.bf16.gmra.mxu3 %vm451_vm1, %v2307_v32 }
  0xba   : > { %v705_v45 = vpop.f32.mrf.mxu2 }
  0xbb   : > { %v794_v46 = vpop.f32.mrf.mxu3  ;;  %v529_v47 = vpop.f32.mrf.mxu0  ;;  %v706_v57 = vadd.f32 %v705_v45, %v3011_v19 }
  0xbc   : > { %v618_v48 = vpop.f32.mrf.mxu1  ;;  %v530_v49 = vadd.f32 %v529_v47, %v2990_v6  ;;  %v795_v58 = vadd.f32 %v794_v46, %v3013_v20 }
  0xbd   : > { %v619_v50 = vadd.f32 %v618_v48, %v2992_v7  ;;  %v879_v2 = vmax.f32 %v706_v57, 0.0 }
  0xbe   : > { %v881_v53 = vmax.f32 %v530_v49, 0.0  ;;  %v880_v3 = vmax.f32 %v795_v58, 0.0 }
  0xbf   : > { %v882_v54 = vmax.f32 %v619_v50, 0.0 }
  0xc0   : > { %v3039_v55 = vpack.c.bf16 %v881_v53, %v877_v51 }
  0xc1   : > { %v3041_v56 = vpack.c.bf16 %v882_v54, %v878_v52 }
  0xc2   : > { %v707_v59 = vpop.f32.mrf.mxu2 }
  0xc3   : > { %v796_v60 = vpop.f32.mrf.mxu3  ;;  %v708_v62 = vadd.f32 %v707_v59, %v3011_v19  ;;  %v532_v0 = vpop.f32.mrf.mxu0 }
  0xc4   : > { %v797_v63 = vadd.f32 %v796_v60, %v3013_v20  ;;  %v621_v1 = vpop.f32.mrf.mxu1  ;;  %v533_v13 = vadd.f32 %v532_v0, %v2990_v6 }
  0xc5   : > { %v883_v4 = vmax.f32 %v708_v62, 0.0  ;;  %v622_v14 = vadd.f32 %v621_v1, %v2992_v7 }
  0xc6   : > { %v884_v5 = vmax.f32 %v797_v63, 0.0  ;;  %2111 = vmatmul.msk.bf16.gmra.mxu0 %vm451_vm1, %v2308_v61  ;;  %2127 = vmatmul.msk.bf16.gmra.mxu1 %vm451_vm1, %v2308_v61  ;;  %v885_v24 = vmax.f32 %v533_v13, 0.0 }
  0xc7   : > { %2143 = vmatmul.msk.bf16.gmra.mxu2 %vm451_vm1, %v2308_v61  ;;  %v3061_v11 = vpack.c.bf16 %v883_v4, %v879_v2  ;;  %v886_v25 = vmax.f32 %v622_v14, 0.0 }
  0xc8   : > { %2159 = vmatmul.msk.bf16.gmra.mxu3 %vm451_vm1, %v2308_v61  ;;  %v3063_v12 = vpack.c.bf16 %v884_v5, %v880_v3  ;;  %v2310_v5 = vld [vmem:[%s2887_s11 + $0x60] sm:$0xff] }
  0xca   : > { %v710_v15 = vpop.f32.mrf.mxu2 }
  0xcb   : > { %v799_v16 = vpop.f32.mrf.mxu3  ;;  %v534_v17 = vpop.f32.mrf.mxu0  ;;  %v711_v32 = vadd.f32 %v710_v15, %v3011_v19 }
  0xcc   : > { %v623_v18 = vpop.f32.mrf.mxu1  ;;  %v535_v21 = vadd.f32 %v534_v17, %v2990_v6  ;;  %v800_v33 = vadd.f32 %v799_v16, %v3013_v20 }
  0xcd   : > { %v624_v22 = vadd.f32 %v623_v18, %v2992_v7  ;;  %v887_v43 = vmax.f32 %v711_v32, 0.0  ;;  %v2338_v18 = vld [vmem:[%s3584_s3 + $0x80] sm:$0xff] }
  0xce   : > { %v889_v28 = vmax.f32 %v535_v21, 0.0  ;;  %v888_v44 = vmax.f32 %v800_v33, 0.0  ;;  %v2322_v21 = vld [vmem:[%s3584_s3] sm:$0xff]  ;;  %1506 = vmatpush.bf16.msrb.mxu2 %v2338_v18 }
  0xcf   : > { %v890_v29 = vmax.f32 %v624_v22, 0.0  ;;  %v2346_v22 = vld [vmem:[%s3584_s3 + $0xc0] sm:$0xff]  ;;  %1328 = vmatpush.bf16.msrb.mxu0 %v2322_v21 }
  0xd0   : > { %v3072_v30 = vpack.c.bf16 %v889_v28, %v885_v24  ;;  %1595 = vmatpush.bf16.msrb.mxu3 %v2346_v22 }
  0xd1   : > { %v3074_v31 = vpack.c.bf16 %v890_v29, %v886_v25 }
  0xd2   : > { %v712_v34 = vpop.f32.mrf.mxu2 }
  0xd3   : > { %v801_v35 = vpop.f32.mrf.mxu3  ;;  %v713_v37 = vadd.f32 %v712_v34, %v3011_v19  ;;  %v537_v39 = vpop.f32.mrf.mxu0 }
  0xd4   : > { %v802_v38 = vadd.f32 %v801_v35, %v3013_v20  ;;  %v626_v40 = vpop.f32.mrf.mxu1  ;;  %v538_v49 = vadd.f32 %v537_v39, %v2990_v6 }
  0xd5   : > { %v891_v45 = vmax.f32 %v713_v37, 0.0  ;;  %v627_v50 = vadd.f32 %v626_v40, %v2992_v7  ;;  %v2330_v37 = vld [vmem:[%s3584_s3 + $0x40] sm:$0xff] }
  0xd6   : > { %v892_v46 = vmax.f32 %v802_v38, 0.0  ;;  %2112 = vmatmul.msk.bf16.gmra.mxu0 %vm451_vm1, %v2309_v36  ;;  %2128 = vmatmul.msk.bf16.gmra.mxu1 %vm451_vm1, %v2309_v36  ;;  %v893_v59 = vmax.f32 %v538_v49, 0.0 }
  0xd7   : > { %2144 = vmatmul.msk.bf16.gmra.mxu2 %vm451_vm1, %v2309_v36  ;;  %v3085_v47 = vpack.c.bf16 %v891_v45, %v887_v43  ;;  %v894_v60 = vmax.f32 %v627_v50, 0.0  ;;  %1417 = vmatpush.bf16.msrb.mxu1 %v2330_v37 }
  0xd8   : > { %2160 = vmatmul.msk.bf16.gmra.mxu3 %vm451_vm1, %v2309_v36  ;;  %v3087_v48 = vpack.c.bf16 %v892_v46, %v888_v44 }
  0xda   : > { %v715_v51 = vpop.f32.mrf.mxu2 }
  0xdb   : > { %v804_v52 = vpop.f32.mrf.mxu3  ;;  %v539_v53 = vpop.f32.mrf.mxu0  ;;  %v716_v1 = vadd.f32 %v715_v51, %v3011_v19 }
  0xdc   : > { %v628_v54 = vpop.f32.mrf.mxu1  ;;  %v540_v57 = vadd.f32 %v539_v53, %v2990_v6  ;;  %v805_v2 = vadd.f32 %v804_v52, %v3013_v20  ;;  %v2311_v52 = vld [vmem:[%s2887_s11 + $0x68] sm:$0xff] }
  0xdd   : > { %v629_v58 = vadd.f32 %v628_v54, %v2992_v7  ;;  %v895_v14 = vmax.f32 %v716_v1, 0.0 }
  0xde   : > { %v897_v61 = vmax.f32 %v540_v57, 0.0  ;;  %v896_v15 = vmax.f32 %v805_v2, 0.0 }
  0xdf   : > { %v898_v62 = vmax.f32 %v629_v58, 0.0 }
  0xe0   : > { %v3093_v63 = vpack.c.bf16 %v897_v61, %v893_v59 }
  0xe1   : > { %v3095_v0 = vpack.c.bf16 %v898_v62, %v894_v60 }
  0xe2   : > { %v717_v3 = vpop.f32.mrf.mxu2 }
  0xe3   : > { %v806_v4 = vpop.f32.mrf.mxu3  ;;  %v718_v8 = vadd.f32 %v717_v3, %v3011_v19  ;;  %v542_v10 = vpop.f32.mrf.mxu0 }
  0xe4   : > { %v807_v9 = vadd.f32 %v806_v4, %v3013_v20  ;;  %v631_v13 = vpop.f32.mrf.mxu1  ;;  %v543_v25 = vadd.f32 %v542_v10, %v2990_v6 }
  0xe5   : > { %v899_v16 = vmax.f32 %v718_v8, 0.0  ;;  %v632_v28 = vadd.f32 %v631_v13, %v2992_v7 }
  0xe6   : > { %v900_v17 = vmax.f32 %v807_v9, 0.0  ;;  %2113 = vmatmul.msk.bf16.gmra.mxu0 %vm451_vm1, %v2310_v5  ;;  %2129 = vmatmul.msk.bf16.gmra.mxu1 %vm451_vm1, %v2310_v5  ;;  %v901_v38 = vmax.f32 %v543_v25, 0.0 }
  0xe7   : > { %2145 = vmatmul.msk.bf16.gmra.mxu2 %vm451_vm1, %v2310_v5  ;;  %v3115_v23 = vpack.c.bf16 %v899_v16, %v895_v14  ;;  %v902_v39 = vmax.f32 %v632_v28, 0.0 }
  0xe8   : > { %2161 = vmatmul.msk.bf16.gmra.mxu3 %vm451_vm1, %v2310_v5  ;;  %v3117_v24 = vpack.c.bf16 %v900_v17, %v896_v15 }
  0xea   : > { %v720_v29 = vpop.f32.mrf.mxu2 }
  0xeb   : > { %v809_v32 = vpop.f32.mrf.mxu3  ;;  %v544_v33 = vpop.f32.mrf.mxu0  ;;  %v721_v46 = vadd.f32 %v720_v29, %v3011_v19 }
  0xec   : > { %v633_v34 = vpop.f32.mrf.mxu1  ;;  %v545_v35 = vadd.f32 %v544_v33, %v2990_v6  ;;  %v810_v49 = vadd.f32 %v809_v32, %v3013_v20  ;;  %v2312_v33 = vld [vmem:[%s2887_s11 + $0x70] sm:$0xff] }
  0xed   : > { %v634_v36 = vadd.f32 %v633_v34, %v2992_v7  ;;  %v903_v59 = vmax.f32 %v721_v46, 0.0 }
  0xee   : > { %v905_v40 = vmax.f32 %v545_v35, 0.0  ;;  %v904_v60 = vmax.f32 %v810_v49, 0.0 }
  0xef   : > { %v906_v43 = vmax.f32 %v634_v36, 0.0 }
  0xf0   : > { %v3126_v44 = vpack.c.bf16 %v905_v40, %v901_v38 }
  0xf1   : > { %v3128_v45 = vpack.c.bf16 %v906_v43, %v902_v39 }
  0xf2   : > { %v722_v50 = vpop.f32.mrf.mxu2 }
  0xf3   : > { %v811_v51 = vpop.f32.mrf.mxu3  ;;  %v723_v53 = vadd.f32 %v722_v50, %v3011_v19  ;;  %v547_v57 = vpop.f32.mrf.mxu0 }
  0xf4   : > { %v812_v54 = vadd.f32 %v811_v51, %v3013_v20  ;;  %v636_v58 = vpop.f32.mrf.mxu1  ;;  %v548_v3 = vadd.f32 %v547_v57, %v2990_v6 }
  0xf5   : > { %v907_v61 = vmax.f32 %v723_v53, 0.0  ;;  %v637_v4 = vadd.f32 %v636_v58, %v2992_v7 }
  0xf6   : > { %v908_v62 = vmax.f32 %v812_v54, 0.0  ;;  %2114 = vmatmul.msk.bf16.gmra.mxu0 %vm451_vm1, %v2311_v52  ;;  %2130 = vmatmul.msk.bf16.gmra.mxu1 %vm451_vm1, %v2311_v52  ;;  %v909_v15 = vmax.f32 %v548_v3, 0.0 }
  0xf7   : > { %2146 = vmatmul.msk.bf16.gmra.mxu2 %vm451_vm1, %v2311_v52  ;;  %v3139_v1 = vpack.c.bf16 %v907_v61, %v903_v59  ;;  %v910_v16 = vmax.f32 %v637_v4, 0.0 }
  0xf8   : > { %2162 = vmatmul.msk.bf16.gmra.mxu3 %vm451_vm1, %v2311_v52  ;;  %v3141_v2 = vpack.c.bf16 %v908_v62, %v904_v60 }
  0xfa   : > { %v725_v5 = vpop.f32.mrf.mxu2 }
  0xfb   : > { %v814_v8 = vpop.f32.mrf.mxu3  ;;  %v549_v9 = vpop.f32.mrf.mxu0  ;;  %v726_v25 = vadd.f32 %v725_v5, %v3011_v19 }
  0xfc   : > { %v638_v10 = vpop.f32.mrf.mxu1  ;;  %v550_v13 = vadd.f32 %v549_v9, %v2990_v6  ;;  %v815_v28 = vadd.f32 %v814_v8, %v3013_v20 }
  0xfd   : > { %v639_v14 = vadd.f32 %v638_v10, %v2992_v7  ;;  %v911_v38 = vmax.f32 %v726_v25, 0.0 }
  0xfe   : > { %v913_v17 = vmax.f32 %v550_v13, 0.0  ;;  %v912_v39 = vmax.f32 %v815_v28, 0.0 }
  0xff   : > { %v914_v18 = vmax.f32 %v639_v14, 0.0  ;;  %v2313_v14 = vld [vmem:[%s2887_s11 + $0x78] sm:$0xff]  ;;  %s2677_s11 = sshra.s32 %s1922_s19, 4  ;;  %s2678_s11 = int_to_ptr.hbm [resolvable:$true] %s2677_s11 }
 0x100   : > { %v3147_v21 = vpack.c.bf16 %v913_v17, %v909_v15  ;;  %s2679_s14 = scalar_lea.hbm %s2678_s11, 128  ;;  %p2684_p3 = scmp.lt.s32.totalorder %s2678_s11, %s3587_s6 }
 0x101   : > { %v3149_v22 = vpack.c.bf16 %v914_v18, %v910_v16  ;;  %p2680_p0 = scmp.ne.s32.totalorder %s2678_s11, %s2679_s14  ;;  %p2685_p4 = scmp.lt.s32.totalorder %s2683_s29, %s2679_s14 }
 0x102   : > { %v727_v29 = vpop.f32.mrf.mxu2 }
 0x103   : > { %v816_v32 = vpop.f32.mrf.mxu3  ;;  %v728_v34 = vadd.f32 %v727_v29, %v3011_v19  ;;  %v552_v36 = vpop.f32.mrf.mxu0  ;;  %p2681_p1 = pnand %p2680_p0, %p2808_p5  ;;  %p2686_p7 = por %p2685_p4, %p2684_p3 }
 0x104   : > { %v817_v35 = vadd.f32 %v816_v32, %v3013_v20  ;;  %v641_v37 = vpop.f32.mrf.mxu1  ;;  %v553_v50 = vadd.f32 %v552_v36, %v2990_v6 }
 0x105   : > { %v915_v40 = vmax.f32 %v728_v34, 0.0  ;;  %v642_v51 = vadd.f32 %v641_v37, %v2992_v7  ;;  %p2682_p2 = pneg %p2681_p1 }
 0x106   : > { %v916_v43 = vmax.f32 %v817_v35, 0.0  ;;  %2115 = vmatmul.msk.bf16.gmra.mxu0 %vm451_vm1, %v2312_v33  ;;  %2131 = vmatmul.msk.bf16.gmra.mxu1 %vm451_vm1, %v2312_v33  ;;  %v917_v60 = vmax.f32 %v553_v50, 0.0 }
 0x107   : > { %2147 = vmatmul.msk.bf16.gmra.mxu2 %vm451_vm1, %v2312_v33  ;;  %v3160_v46 = vpack.c.bf16 %v915_v40, %v911_v38  ;;  %v918_v61 = vmax.f32 %v642_v51, 0.0  ;;  %p2687_p8 = pnand %p2686_p7, %p2682_p2 }
 0x108   : > { %2163 = vmatmul.msk.bf16.gmra.mxu3 %vm451_vm1, %v2312_v33  ;;  %v3162_v49 = vpack.c.bf16 %v916_v43, %v912_v39 }
 0x10a   : > { %v730_v52 = vpop.f32.mrf.mxu2 }
 0x10b   : > { %v819_v53 = vpop.f32.mrf.mxu3  ;;  %v554_v54 = vpop.f32.mrf.mxu0  ;;  %v731_v8 = vadd.f32 %v730_v52, %v3011_v19 }
 0x10c   : > { %v643_v57 = vpop.f32.mrf.mxu1  ;;  %v555_v58 = vadd.f32 %v554_v54, %v2990_v6  ;;  %v820_v9 = vadd.f32 %v819_v53, %v3013_v20 }
 0x10d   : > { %v644_v59 = vadd.f32 %v643_v57, %v2992_v7  ;;  %v919_v25 = vmax.f32 %v731_v8, 0.0 }
 0x10e   : > { %v921_v62 = vmax.f32 %v555_v58, 0.0  ;;  %v920_v28 = vmax.f32 %v820_v9, 0.0 }
 0x10f   : > { %v922_v3 = vmax.f32 %v644_v59, 0.0 }
 0x110   : > { %v3168_v4 = vpack.c.bf16 %v921_v62, %v917_v60 }
 0x111   : > { %v3170_v5 = vpack.c.bf16 %v922_v3, %v918_v61 }
 0x112   : > { %v732_v10 = vpop.f32.mrf.mxu2 }
 0x113   : > { %v821_v13 = vpop.f32.mrf.mxu3  ;;  %v733_v15 = vadd.f32 %v732_v10, %v3011_v19  ;;  %v557_v17 = vpop.f32.mrf.mxu0 }
 0x114   : > { %v822_v16 = vadd.f32 %v821_v13, %v3013_v20  ;;  %v646_v18 = vpop.f32.mrf.mxu1  ;;  %v558_v35 = vadd.f32 %v557_v17, %v2990_v6 }
 0x115   : > { %v923_v29 = vmax.f32 %v733_v15, 0.0  ;;  %v647_v36 = vadd.f32 %v646_v18, %v2992_v7 }
 0x116   : > { %v924_v32 = vmax.f32 %v822_v16, 0.0  ;;  %2116 = vmatmul.msk.bf16.gmra.mxu0 %vm451_vm1, %v2313_v14  ;;  %2132 = vmatmul.msk.bf16.gmra.mxu1 %vm451_vm1, %v2313_v14  ;;  %v925_v51 = vmax.f32 %v558_v35, 0.0 }
 0x117   : > { %2148 = vmatmul.msk.bf16.gmra.mxu2 %vm451_vm1, %v2313_v14  ;;  %v3181_v33 = vpack.c.bf16 %v923_v29, %v919_v25  ;;  %v926_v52 = vmax.f32 %v647_v36, 0.0 }
 0x118   : > { %2164 = vmatmul.msk.bf16.gmra.mxu3 %vm451_vm1, %v2313_v14  ;;  %v3183_v34 = vpack.c.bf16 %v924_v32, %v920_v28 }
 0x11a   : > { %v735_v37 = vpop.f32.mrf.mxu2 }
 0x11b   : > { %v824_v38 = vpop.f32.mrf.mxu3  ;;  %v559_v39 = vpop.f32.mrf.mxu0  ;;  %v736_v59 = vadd.f32 %v735_v37, %v3011_v19 }
 0x11c   : > { %v648_v40 = vpop.f32.mrf.mxu1  ;;  %v560_v43 = vadd.f32 %v559_v39, %v2990_v6  ;;  %v825_v60 = vadd.f32 %v824_v38, %v3013_v20 }
 0x11d   : > { %v649_v50 = vadd.f32 %v648_v40, %v2992_v7  ;;  %v927_v13 = vmax.f32 %v736_v59, 0.0 }
 0x11e   : > { %v929_v53 = vmax.f32 %v560_v43, 0.0  ;;  %v928_v14 = vmax.f32 %v825_v60, 0.0 }
 0x11f   : > { %v930_v54 = vmax.f32 %v649_v50, 0.0 }
 0x120   : > { %v3189_v57 = vpack.c.bf16 %v929_v53, %v925_v51 }
 0x121   : > { %v3191_v58 = vpack.c.bf16 %v930_v54, %v926_v52 }
 0x122   : > { %v737_v61 = vpop.f32.mrf.mxu2 }
 0x123   : > { %v826_v62 = vpop.f32.mrf.mxu3  ;;  %v738_v3 = vadd.f32 %v737_v61, %v3011_v19  ;;  %v562_v9 = vpop.f32.mrf.mxu0 }
 0x124   : > { %v827_v8 = vadd.f32 %v826_v62, %v3013_v20  ;;  %v651_v10 = vpop.f32.mrf.mxu1  ;;  %v563_v25 = vadd.f32 %v562_v9, %v2990_v6 }
 0x125   : > { %v931_v15 = vmax.f32 %v738_v3, 0.0  ;;  %v652_v28 = vadd.f32 %v651_v10, %v2992_v7 }
 0x126   : > { %v932_v16 = vmax.f32 %v827_v8, 0.0  ;;  %1329 = vmatmul.bf16.vlgmr.msrb.gmra.mxu0 %v3018_v26  ;;  %1418 = vmatmul.bf16.vlgmr.msrb.gmra.mxu1 %v3020_v27  ;;  %v933_v37 = vmax.f32 %v563_v25, 0.0 }
 0x127   : > { %1507 = vmatmul.bf16.vlgmr.msrb.gmra.mxu2 %v3029_v41  ;;  %v3201_v17 = vpack.c.bf16 %v931_v15, %v927_v13  ;;  %v934_v41 = vmax.f32 %v652_v28, 0.0 }
 0x128   : > { %1596 = vmatmul.bf16.vlgmr.msrb.gmra.mxu3 %v3031_v42  ;;  %v3203_v18 = vpack.c.bf16 %v932_v16, %v928_v14 }
 0x12a   : > { %v740_v29 = vpop.f32.mrf.mxu2 }
 0x12b   : > { %v829_v32 = vpop.f32.mrf.mxu3  ;;  %v564_v35 = vpop.f32.mrf.mxu0  ;;  %v741_v43 = vadd.f32 %v740_v29, %v3011_v19 }
 0x12c   : > { %v653_v36 = vpop.f32.mrf.mxu1  ;;  %v565_v26 = vadd.f32 %v564_v35, %v2990_v6  ;;  %v830_v50 = vadd.f32 %v829_v32, %v3013_v20 }
 0x12d   : > { %v654_v27 = vadd.f32 %v653_v36, %v2992_v7  ;;  %v935_v61 = vmax.f32 %v741_v43, 0.0 }
 0x12e   : > { %v937_v38 = vmax.f32 %v565_v26, 0.0  ;;  %v936_v62 = vmax.f32 %v830_v50, 0.0 }
 0x12f   : > { %v938_v42 = vmax.f32 %v654_v27, 0.0 }
 0x130   : > { %v3209_v39 = vpack.c.bf16 %v937_v38, %v933_v37 }
 0x131   : > { %v3211_v40 = vpack.c.bf16 %v938_v42, %v934_v41 }
 0x132   : > { %v742_v51 = vpop.f32.mrf.mxu2 }
 0x133   : > { %v831_v52 = vpop.f32.mrf.mxu3  ;;  %v743_v53 = vadd.f32 %v742_v51, %v3011_v19  ;;  %v567_v59 = vpop.f32.mrf.mxu0 }
 0x134   : > { %v832_v54 = vadd.f32 %v831_v52, %v3013_v20  ;;  %v656_v60 = vpop.f32.mrf.mxu1  ;;  %v568_v13 = vadd.f32 %v567_v59, %v2990_v6 }
 0x135   : > { %v939_v3 = vmax.f32 %v743_v53, 0.0  ;;  %v657_v14 = vadd.f32 %v656_v60, %v2992_v7 }
 0x136   : > { %v940_v8 = vmax.f32 %v832_v54, 0.0  ;;  %1334 = vmatmul.bf16.gmra.mxu0 %v3039_v55  ;;  %1423 = vmatmul.bf16.gmra.mxu1 %v3041_v56  ;;  %v941_v29 = vmax.f32 %v568_v13, 0.0 }
 0x137   : > { %1512 = vmatmul.bf16.gmra.mxu2 %v3061_v11  ;;  %v3221_v9 = vpack.c.bf16 %v939_v3, %v935_v61  ;;  %v942_v11 = vmax.f32 %v657_v14, 0.0 }
 0x138   : > { %1601 = vmatmul.bf16.gmra.mxu3 %v3063_v12  ;;  %v3223_v10 = vpack.c.bf16 %v940_v8, %v936_v62 }
 0x13a   : > { %v745_v15 = vpop.f32.mrf.mxu2 }
 0x13b   : > { %v834_v16 = vpop.f32.mrf.mxu3  ;;  %v569_v25 = vpop.f32.mrf.mxu0  ;;  %v746_v26 = vadd.f32 %v745_v15, %v3011_v19 }
 0x13c   : > { %v658_v28 = vpop.f32.mrf.mxu1  ;;  %v570_v55 = vadd.f32 %v569_v25, %v2990_v6  ;;  %v835_v27 = vadd.f32 %v834_v16, %v3013_v20 }
 0x13d   : > { %v659_v56 = vadd.f32 %v658_v28, %v2992_v7  ;;  %v943_v51 = vmax.f32 %v746_v26, 0.0 }
 0x13e   : > { %v945_v32 = vmax.f32 %v570_v55, 0.0  ;;  %v944_v52 = vmax.f32 %v835_v27, 0.0 }
 0x13f   : > { %v946_v12 = vmax.f32 %v659_v56, 0.0 }
 0x140   : > { %v3229_v35 = vpack.c.bf16 %v945_v32, %v941_v29 }
 0x141   : > { %v3231_v36 = vpack.c.bf16 %v946_v12, %v942_v11 }
 0x142   : > { %v747_v37 = vpop.f32.mrf.mxu2 }
 0x143   : > { %v836_v41 = vpop.f32.mrf.mxu3  ;;  %v748_v38 = vadd.f32 %v747_v37, %v3011_v19  ;;  %v572_v43 = vpop.f32.mrf.mxu0 }
 0x144   : > { %v837_v42 = vadd.f32 %v836_v41, %v3013_v20  ;;  %v661_v50 = vpop.f32.mrf.mxu1  ;;  %v573_v61 = vadd.f32 %v572_v43, %v2990_v6 }
 0x145   : > { %v947_v53 = vmax.f32 %v748_v38, 0.0  ;;  %v662_v62 = vadd.f32 %v661_v50, %v2992_v7 }
 0x146   : > { %v948_v54 = vmax.f32 %v837_v42, 0.0  ;;  %1339 = vmatmul.bf16.gmra.mxu0 %v3072_v30  ;;  %1428 = vmatmul.bf16.gmra.mxu1 %v3074_v31  ;;  %v949_v15 = vmax.f32 %v573_v61, 0.0 }
 0x147   : > { %1517 = vmatmul.bf16.gmra.mxu2 %v3085_v47  ;;  %v3241_v59 = vpack.c.bf16 %v947_v53, %v943_v51  ;;  %v950_v47 = vmax.f32 %v662_v62, 0.0 }
 0x148   : > { %1606 = vmatmul.bf16.gmra.mxu3 %v3087_v48  ;;  %v3243_v60 = vpack.c.bf16 %v948_v54, %v944_v52 }
 0x14a   : > { %v750_v3 = vpop.f32.mrf.mxu2 }
 0x14b   : > { %v839_v8 = vpop.f32.mrf.mxu3  ;;  %v574_v13 = vpop.f32.mrf.mxu0  ;;  %v751_v55 = vadd.f32 %v750_v3, %v3011_v19 }
 0x14c   : > { %v663_v14 = vpop.f32.mrf.mxu1  ;;  %v575_v30 = vadd.f32 %v574_v13, %v2990_v6  ;;  %v840_v56 = vadd.f32 %v839_v8, %v3013_v20 }
 0x14d   : > { %v664_v31 = vadd.f32 %v663_v14, %v2992_v7  ;;  %v951_v37 = vmax.f32 %v751_v55, 0.0 }
 0x14e   : > { %v953_v16 = vmax.f32 %v575_v30, 0.0  ;;  %v952_v41 = vmax.f32 %v840_v56, 0.0 }
 0x14f   : > { %v954_v48 = vmax.f32 %v664_v31, 0.0 }
 0x150   : > { %v3249_v25 = vpack.c.bf16 %v953_v16, %v949_v15 }
 0x151   : > { %v3251_v28 = vpack.c.bf16 %v954_v48, %v950_v47 }
 0x152   : > { %v752_v29 = vpop.f32.mrf.mxu2 }
 0x153   : > { %v841_v11 = vpop.f32.mrf.mxu3  ;;  %v753_v32 = vadd.f32 %v752_v29, %v3011_v19  ;;  %v577_v26 = vpop.f32.mrf.mxu0 }
 0x154   : > { %v842_v12 = vadd.f32 %v841_v11, %v3013_v20  ;;  %v666_v27 = vpop.f32.mrf.mxu1  ;;  %v578_v51 = vadd.f32 %v577_v26, %v2990_v6 }
 0x155   : > { %v955_v38 = vmax.f32 %v753_v32, 0.0  ;;  %v667_v52 = vadd.f32 %v666_v27, %v2992_v7 }
 0x156   : > { %v956_v42 = vmax.f32 %v842_v12, 0.0  ;;  %1344 = vmatmul.bf16.gmra.mxu0 %v3093_v63  ;;  %1433 = vmatmul.bf16.gmra.mxu1 %v3095_v0  ;;  %v957_v3 = vmax.f32 %v578_v51, 0.0 }
 0x157   : > { %1522 = vmatmul.bf16.gmra.mxu2 %v3115_v23  ;;  %v3261_v43 = vpack.c.bf16 %v955_v38, %v951_v37  ;;  %v958_v23 = vmax.f32 %v667_v52, 0.0 }
 0x158   : > { %1611 = vmatmul.bf16.gmra.mxu3 %v3117_v24  ;;  %v3263_v50 = vpack.c.bf16 %v956_v42, %v952_v41 }
 0x15a   : > { %v755_v53 = vpop.f32.mrf.mxu2 }
 0x15b   : > { %v844_v54 = vpop.f32.mrf.mxu3  ;;  %v579_v61 = vpop.f32.mrf.mxu0  ;;  %v756_v30 = vadd.f32 %v755_v53, %v3011_v19 }
 0x15c   : > { %v668_v62 = vpop.f32.mrf.mxu1  ;;  %v580_v63 = vadd.f32 %v579_v61, %v2990_v6  ;;  %v845_v31 = vadd.f32 %v844_v54, %v3013_v20 }
 0x15d   : > { %v669_v0 = vadd.f32 %v668_v62, %v2992_v7  ;;  %v959_v29 = vmax.f32 %v756_v30, 0.0 }
 0x15e   : > { %v961_v8 = vmax.f32 %v580_v63, 0.0  ;;  %v960_v11 = vmax.f32 %v845_v31, 0.0 }
 0x15f   : > { %v962_v24 = vmax.f32 %v669_v0, 0.0 }
 0x160   : > { %v3269_v13 = vpack.c.bf16 %v961_v8, %v957_v3 }
 0x161   : > { %v3271_v14 = vpack.c.bf16 %v962_v24, %v958_v23 }
 0x162   : > { %v757_v15 = vpop.f32.mrf.mxu2 }
 0x163   : > { %v846_v47 = vpop.f32.mrf.mxu3  ;;  %v758_v16 = vadd.f32 %v757_v15, %v3011_v19  ;;  %v582_v55 = vpop.f32.mrf.mxu0 }
 0x164   : > { %v847_v48 = vadd.f32 %v846_v47, %v3013_v20  ;;  %v671_v56 = vpop.f32.mrf.mxu1  ;;  %v583_v37 = vadd.f32 %v582_v55, %v2990_v6 }
 0x165   : > { %v963_v32 = vmax.f32 %v758_v16, 0.0  ;;  %v672_v41 = vadd.f32 %v671_v56, %v2992_v7 }
 0x166   : > { %v964_v12 = vmax.f32 %v847_v48, 0.0  ;;  %1349 = vmatmul.bf16.gmra.mxu0 %v3126_v44  ;;  %1438 = vmatmul.bf16.gmra.mxu1 %v3128_v45  ;;  %v965_v53 = vmax.f32 %v583_v37, 0.0 }
 0x167   : > { %1527 = vmatmul.bf16.gmra.mxu2 %v3139_v1  ;;  %v3281_v26 = vpack.c.bf16 %v963_v32, %v959_v29  ;;  %v966_v1 = vmax.f32 %v672_v41, 0.0 }
 0x168   : > { %1616 = vmatmul.bf16.gmra.mxu3 %v3141_v2  ;;  %v3283_v27 = vpack.c.bf16 %v964_v12, %v960_v11 }
 0x16a   : > { %v760_v38 = vpop.f32.mrf.mxu2 }
 0x16b   : > { %v849_v42 = vpop.f32.mrf.mxu3  ;;  %v584_v51 = vpop.f32.mrf.mxu0  ;;  %v761_v63 = vadd.f32 %v760_v38, %v3011_v19 }
 0x16c   : > { %v673_v52 = vpop.f32.mrf.mxu1  ;;  %v585_v44 = vadd.f32 %v584_v51, %v2990_v6  ;;  %v850_v0 = vadd.f32 %v849_v42, %v3013_v20 }
 0x16d   : > { %v674_v45 = vadd.f32 %v673_v52, %v2992_v7  ;;  %v967_v15 = vmax.f32 %v761_v63, 0.0 }
 0x16e   : > { %v969_v54 = vmax.f32 %v585_v44, 0.0  ;;  %v968_v47 = vmax.f32 %v850_v0, 0.0 }
 0x16f   : > { %v970_v2 = vmax.f32 %v674_v45, 0.0 }
 0x170   : > { %v3289_v61 = vpack.c.bf16 %v969_v54, %v965_v53 }
 0x171   : > { %v3291_v62 = vpack.c.bf16 %v970_v2, %v966_v1 }
 0x172   : > { %v762_v3 = vpop.f32.mrf.mxu2 }
 0x173   : > { %v851_v23 = vpop.f32.mrf.mxu3  ;;  %v763_v8 = vadd.f32 %v762_v3, %v3011_v19  ;;  %v587_v30 = vpop.f32.mrf.mxu0 }
 0x174   : > { %v852_v24 = vadd.f32 %v851_v23, %v3013_v20  ;;  %v676_v31 = vpop.f32.mrf.mxu1  ;;  %v588_v29 = vadd.f32 %v587_v30, %v2990_v6 }
 0x175   : > { %v971_v16 = vmax.f32 %v763_v8, 0.0  ;;  %v677_v11 = vadd.f32 %v676_v31, %v2992_v7 }
 0x176   : > { %v972_v48 = vmax.f32 %v852_v24, 0.0  ;;  %1354 = vmatmul.bf16.gmra.mxu0 %v3147_v21  ;;  %1443 = vmatmul.bf16.gmra.mxu1 %v3149_v22  ;;  %v973_v38 = vmax.f32 %v588_v29, 0.0 }
 0x177   : > { %1532 = vmatmul.bf16.gmra.mxu2 %v3160_v46  ;;  %v3301_v55 = vpack.c.bf16 %v971_v16, %v967_v15  ;;  %v974_v46 = vmax.f32 %v677_v11, 0.0 }
 0x178   : > { %1621 = vmatmul.bf16.gmra.mxu3 %v3162_v49  ;;  %v3303_v56 = vpack.c.bf16 %v972_v48, %v968_v47 }
 0x17a   : > { %v765_v32 = vpop.f32.mrf.mxu2 }
 0x17b   : > { %v854_v12 = vpop.f32.mrf.mxu3  ;;  %v589_v37 = vpop.f32.mrf.mxu0  ;;  %v766_v44 = vadd.f32 %v765_v32, %v3011_v19 }
 0x17c   : > { %v678_v41 = vpop.f32.mrf.mxu1  ;;  %v590_v21 = vadd.f32 %v589_v37, %v2990_v6  ;;  %v855_v45 = vadd.f32 %v854_v12, %v3013_v20 }
 0x17d   : > { %v679_v22 = vadd.f32 %v678_v41, %v2992_v7  ;;  %v975_v3 = vmax.f32 %v766_v44, 0.0 }
 0x17e   : > { %v977_v42 = vmax.f32 %v590_v21, 0.0  ;;  %v976_v23 = vmax.f32 %v855_v45, 0.0 }
 0x17f   : > { %v978_v49 = vmax.f32 %v679_v22, 0.0 }
 0x180   : > { %v3309_v51 = vpack.c.bf16 %v977_v42, %v973_v38 }
 0x181   : > { %v3311_v52 = vpack.c.bf16 %v978_v49, %v974_v46 }
 0x182   : > { %v767_v53 = vpop.f32.mrf.mxu2 }
 0x183   : > { %v856_v1 = vpop.f32.mrf.mxu3  ;;  %v768_v54 = vadd.f32 %v767_v53, %v3011_v19  ;;  %v592_v63 = vpop.f32.mrf.mxu0 }
 0x184   : > { %v857_v2 = vadd.f32 %v856_v1, %v3013_v20  ;;  %v681_v0 = vpop.f32.mrf.mxu1  ;;  %v593_v15 = vadd.f32 %v592_v63, %v2990_v6 }
 0x185   : > { %v979_v8 = vmax.f32 %v768_v54, 0.0  ;;  %v682_v47 = vadd.f32 %v681_v0, %v2992_v7 }
 0x186   : > { %v980_v24 = vmax.f32 %v857_v2, 0.0  ;;  %1359 = vmatmul.bf16.gmra.mxu0 %v3168_v4  ;;  %1448 = vmatmul.bf16.gmra.mxu1 %v3170_v5  ;;  %v981_v32 = vmax.f32 %v593_v15, 0.0 }
 0x187   : > { %1537 = vmatmul.bf16.gmra.mxu2 %v3181_v33  ;;  %v3321_v30 = vpack.c.bf16 %v979_v8, %v975_v3  ;;  %v982_v33 = vmax.f32 %v682_v47, 0.0 }
 0x188   : > { %1626 = vmatmul.bf16.gmra.mxu3 %v3183_v34  ;;  %v3323_v31 = vpack.c.bf16 %v980_v24, %v976_v23 }
 0x18a   : > { %v770_v16 = vpop.f32.mrf.mxu2 }
 0x18b   : > { %v859_v48 = vpop.f32.mrf.mxu3  ;;  %v594_v29 = vpop.f32.mrf.mxu0  ;;  %v771_v21 = vadd.f32 %v770_v16, %v3011_v19 }
 0x18c   : > { %v683_v11 = vpop.f32.mrf.mxu1  ;;  %v595_v4 = vadd.f32 %v594_v29, %v2990_v6  ;;  %v860_v22 = vadd.f32 %v859_v48, %v3013_v20 }
 0x18d   : > { %v684_v5 = vadd.f32 %v683_v11, %v2992_v7  ;;  %v983_v53 = vmax.f32 %v771_v21, 0.0 }
 0x18e   : > { %v985_v12 = vmax.f32 %v595_v4, 0.0  ;;  %v984_v1 = vmax.f32 %v860_v22, 0.0 }
 0x18f   : > { %v986_v34 = vmax.f32 %v684_v5, 0.0 }
 0x190   : > { %v3329_v37 = vpack.c.bf16 %v985_v12, %v981_v32  ;;  %v3358_v32 = vld [vmem:[%s3585_s4] ss:$0 sm:$0xff] }
 0x191   : > { %v3331_v41 = vpack.c.bf16 %v986_v34, %v982_v33 }
 0x192   : > { %v772_v38 = vpop.f32.mrf.mxu2 }
 0x193   : > { %v861_v46 = vpop.f32.mrf.mxu3  ;;  %v773_v42 = vadd.f32 %v772_v38, %v3011_v19  ;;  %v597_v44 = vpop.f32.mrf.mxu0 }
 0x194   : > { %v862_v49 = vadd.f32 %v861_v46, %v3013_v20  ;;  %v686_v45 = vpop.f32.mrf.mxu1  ;;  %v598_v3 = vadd.f32 %v597_v44, %v2990_v6 }
 0x195   : > { %v987_v54 = vmax.f32 %v773_v42, 0.0  ;;  %v687_v23 = vadd.f32 %v686_v45, %v2992_v7 }
 0x196   : > { %v988_v2 = vmax.f32 %v862_v49, 0.0  ;;  %1364 = vmatmul.bf16.gmra.mxu0 %v3189_v57  ;;  %1453 = vmatmul.bf16.gmra.mxu1 %v3191_v58  ;;  %v989_v16 = vmax.f32 %v598_v3, 0.0 }
 0x197   : > { %1542 = vmatmul.bf16.gmra.mxu2 %v3201_v17  ;;  %v3341_v63 = vpack.c.bf16 %v987_v54, %v983_v53  ;;  %v990_v17 = vmax.f32 %v687_v23, 0.0 }
 0x198   : > { %1631 = vmatmul.bf16.gmra.mxu3 %v3203_v18  ;;  %v3343_v0 = vpack.c.bf16 %v988_v2, %v984_v1 }
 0x19a   : > { %v775_v8 = vpop.f32.mrf.mxu2 }
 0x19b   : > { %v864_v24 = vpop.f32.mrf.mxu3  ;;  %v599_v15 = vpop.f32.mrf.mxu0  ;;  %v776_v29 = vadd.f32 %v775_v8, %v3011_v19 }
 0x19c   : > { %v688_v47 = vpop.f32.mrf.mxu1  ;;  %v600_v57 = vadd.f32 %v599_v15, %v2990_v6  ;;  %v865_v5 = vadd.f32 %v864_v24, %v3013_v20 }
 0x19d   : > { %v689_v58 = vadd.f32 %v688_v47, %v2992_v7  ;;  %v991_v22 = vmax.f32 %v776_v29, 0.0 }
 0x19e   : > { %v993_v48 = vmax.f32 %v600_v57, 0.0  ;;  %v992_v38 = vmax.f32 %v865_v5, 0.0 }
 0x19f   : > { %v994_v18 = vmax.f32 %v689_v58, 0.0 }
 0x1a0   : > { %v3350_v11 = vpack.c.bf16 %v993_v48, %v989_v16 }
 0x1a1   : > { %v3352_v4 = vpack.c.bf16 %v994_v18, %v990_v17  ;;  %v1805_v17 = vld [vmem:[%s3586_s5] sm:$0x1] }
 0x1a2   : > { %v777_v6 = vpop.f32.mrf.mxu2  ;;  %vm1806_vm2 = vcmp.gt.f32.partialorder %v1805_v17, 0.5 }
 0x1a3   : > { %v866_v33 = vpop.f32.mrf.mxu3  ;;  %v778_v7 = vadd.f32 %v777_v6, %v3011_v19  ;;  %v1330_v34 = vpop.f32.mrf.mxu0 }
 0x1a4   : > { %v867_v12 = vadd.f32 %v866_v33, %v3013_v20  ;;  %v1419_v21 = vpop.f32.mrf.mxu1  ;;  %v1331_v49 = vadd.f32 %v3358_v32, %v1330_v34 }
 0x1a5   : > { %v995_v46 = vmax.f32 %v778_v7, 0.0  ;;  %v2732_v7 = vmov 0  }
 0x1a6   : > { %v996_v42 = vmax.f32 %v867_v12, 0.0  ;;  %1369 = vmatmul.bf16.gmra.mxu0 %v3209_v39  ;;  %1458 = vmatmul.bf16.gmra.mxu1 %v3211_v40  ;;  %v1420_v20 = vadd.f32 %v1419_v21, %v1331_v49  ;;  %v1807_v12 = vsel %vm1806_vm2, 1, %v2732_v7 }
 0x1a7   : > { %1547 = vmatmul.bf16.gmra.mxu2 %v3221_v9  ;;  %v3367_v44 = vpack.c.bf16 %v995_v46, %v991_v22 }
 0x1a8   : > { %1636 = vmatmul.bf16.gmra.mxu3 %v3223_v10  ;;  %v3369_v19 = vpack.c.bf16 %v996_v42, %v992_v38  ;;  %v1808_v38 = vperm.slane %v1807_v12, 0 }
 0x1aa   : > { %v1508_v45 = vpop.f32.mrf.mxu2  ;;  %vm3389_vm3 = vcmp.eq.s32.totalorder %v1808_v38, 1 }
 0x1ab   : > { %v1597_v53 = vpop.f32.mrf.mxu3  ;;  %v1509_v1 = vadd.f32 %v1508_v45, %v1420_v20  ;;  %v1332_v54 = vpop.f32.mrf.mxu0 }
 0x1ac   : > { %v1421_v2 = vpop.f32.mrf.mxu1  ;;  %v1333_v39 = vadd.f32 %v3358_v32, %v1332_v54 }
 0x1ad   : > { %v3371_v3 = vadd.f32 %v1597_v53, %v1509_v1 }
 0x1ae   : > { %v1422_v23 = vadd.f32 %v1421_v2, %v1333_v39 }
 0x1af   : > { %v1677_v40 = vmul.f32 1.442695, %v3371_v3 }
 0x1b1   : > { %2504 = vpow2.f32 %v1677_v40 }
 0x1b2   : > { %v1510_v9 = vpop.f32.mrf.mxu2 }
 0x1b3   : > { %v1599_v8 = vpop.f32.mrf.mxu3  ;;  %v1511_v10 = vadd.f32 %v1510_v9, %v1422_v23  ;;  %v1335_v24 = vpop.f32.mrf.mxu0 }
 0x1b4   : > { %v1424_v15 = vpop.f32.mrf.mxu1  ;;  %v1336_v57 = vadd.f32 %v3358_v32, %v1335_v24 }
 0x1b5   : > { %v1600_v47 = vadd.f32 %v1599_v8, %v1511_v10 }
 0x1b6   : > { %1374 = vmatmul.bf16.gmra.mxu0 %v3229_v35  ;;  %1463 = vmatmul.bf16.gmra.mxu1 %v3231_v36  ;;  %v1425_v48 = vadd.f32 %v1424_v15, %v1336_v57 }
 0x1b7   : > { %v1679_v58 = vmul.f32 1.442695, %v1600_v47  ;;  %1552 = vmatmul.bf16.gmra.mxu2 %v3241_v59  ;;  %v2505_v16 = vpop.eup %2504 }
 0x1b8   : > { %1641 = vmatmul.bf16.gmra.mxu3 %v3243_v60  ;;  %v1741_v35 = vadd.f32 1.0, %v2505_v16 }
 0x1b9   : > { %2506 = vpow2.f32 %v1679_v58 }
 0x1ba   : > { %v1513_v18 = vpop.f32.mrf.mxu2  ;;  %2508 = vrcp.f32 %v1741_v35 }
 0x1bb   : > { %v1602_v29 = vpop.f32.mrf.mxu3  ;;  %v1514_v5 = vadd.f32 %v1513_v18, %v1425_v48  ;;  %v1337_v6 = vpop.f32.mrf.mxu0 }
 0x1bc   : > { %v1426_v33 = vpop.f32.mrf.mxu1  ;;  %v1338_v59 = vadd.f32 %v3358_v32, %v1337_v6 }
 0x1bd   : > { %v3383_v36 = vadd.f32 %v1602_v29, %v1514_v5 }
 0x1be   : > { %v1427_v22 = vadd.f32 %v1426_v33, %v1338_v59 }
 0x1bf   : > { %v2507_v60 = vpop.eup %2506  ;;  %v1681_v34 = vmul.f32 1.442695, %v3383_v36 }
 0x1c0   : > { %v1742_v21 = vadd.f32 1.0, %v2507_v60  ;;  %v2509_v54 = vpop.eup %2508 }
 0x1c1   : > { %v1810_v9 = vsel %vm3389_vm3, %v2509_v54, %v3371_v3 }
 0x1c2   : > { %2510 = vrcp.f32 %v1742_v21  ;;  %v1515_v46 = vpop.f32.mrf.mxu2 }
 0x1c3   : > { %v1604_v42 = vpop.f32.mrf.mxu3  ;;  %2512 = vpow2.f32 %v1681_v34  ;;  %v1516_v49 = vadd.f32 %v1515_v46, %v1427_v22  ;;  %v1340_v20 = vpop.f32.mrf.mxu0 }
 0x1c4   : > { %v1429_v45 = vpop.f32.mrf.mxu1  ;;  %v1341_v1 = vadd.f32 %v3358_v32, %v1340_v20 }
 0x1c5   : > { %v1605_v53 = vadd.f32 %v1604_v42, %v1516_v49 }
 0x1c6   : > { %1379 = vmatmul.bf16.gmra.mxu0 %v3249_v25  ;;  %1468 = vmatmul.bf16.gmra.mxu1 %v3251_v28  ;;  %v1430_v10 = vadd.f32 %v1429_v45, %v1341_v1 }
 0x1c7   : > { %v1683_v39 = vmul.f32 1.442695, %v1605_v53  ;;  %1557 = vmatmul.bf16.gmra.mxu2 %v3261_v43 }
 0x1c8   : > { %1646 = vmatmul.bf16.gmra.mxu3 %v3263_v50  ;;  %v2511_v40 = vpop.eup %2510 }
 0x1c9   : > { %v2513_v23 = vpop.eup %2512  ;;  %v1811_v8 = vsel %vm3389_vm3, %v2511_v40, %v1600_v47  ;;  %2514 = vpow2.f32 %v1683_v39 }
 0x1ca   : > { %v2358_v24 = vpack.c.bf16 %v1811_v8, %v1810_v9  ;;  %v1518_v25 = vpop.f32.mrf.mxu2  ;;  %v1743_v43 = vadd.f32 1.0, %v2513_v23 }
 0x1cb   : > { %v1607_v15 = vpop.f32.mrf.mxu3  ;;  %v1519_v28 = vadd.f32 %v1518_v25, %v1430_v10  ;;  %v1342_v57 = vpop.f32.mrf.mxu0 }
 0x1cc   : > { %v1431_v58 = vpop.f32.mrf.mxu1  ;;  %2359 = vst [vmem:[%s3404_s9] sm:$0xff] %v2358_v24   ;;  %v1343_v3 = vadd.f32 %v3358_v32, %v1342_v57  ;;  %2516 = vrcp.f32 %v1743_v43 }
 0x1cd   : > { %v3407_v50 = vadd.f32 %v1607_v15, %v1519_v28 }
 0x1ce   : > { %v1432_v48 = vadd.f32 %v1431_v58, %v1343_v3 }
 0x1cf   : > { %v2515_v16 = vpop.eup %2514  ;;  %v1685_v47 = vmul.f32 1.442695, %v3407_v50 }
 0x1d0   : > { %v1744_v17 = vadd.f32 1.0, %v2515_v16 }
 0x1d2   : > { %2518 = vrcp.f32 %v1744_v17  ;;  %v1520_v18 = vpop.f32.mrf.mxu2  ;;  %v2517_v60 = vpop.eup %2516 }
 0x1d3   : > { %v1609_v29 = vpop.f32.mrf.mxu3  ;;  %2520 = vpow2.f32 %v1685_v47  ;;  %v1521_v5 = vadd.f32 %v1520_v18, %v1432_v48  ;;  %v1345_v6 = vpop.f32.mrf.mxu0  ;;  %v1812_v21 = vsel %vm3389_vm3, %v2517_v60, %v3383_v36 }
 0x1d4   : > { %v1434_v33 = vpop.f32.mrf.mxu1  ;;  %v1346_v59 = vadd.f32 %v3358_v32, %v1345_v6 }
 0x1d5   : > { %v1610_v35 = vadd.f32 %v1609_v29, %v1521_v5 }
 0x1d6   : > { %1384 = vmatmul.bf16.gmra.mxu0 %v3269_v13  ;;  %1473 = vmatmul.bf16.gmra.mxu1 %v3271_v14  ;;  %v1435_v38 = vadd.f32 %v1434_v33, %v1346_v59 }
 0x1d7   : > { %v1687_v7 = vmul.f32 1.442695, %v1610_v35  ;;  %1562 = vmatmul.bf16.gmra.mxu2 %v3281_v26 }
 0x1d8   : > { %1651 = vmatmul.bf16.gmra.mxu3 %v3283_v27  ;;  %v2519_v12 = vpop.eup %2518 }
 0x1d9   : > { %v2521_v34 = vpop.eup %2520  ;;  %v1813_v22 = vsel %vm3389_vm3, %v2519_v12, %v1605_v53  ;;  %2522 = vpow2.f32 %v1687_v7 }
 0x1da   : > { %v2363_v13 = vpack.c.bf16 %v1813_v22, %v1812_v21  ;;  %v1523_v46 = vpop.f32.mrf.mxu2  ;;  %v1745_v26 = vadd.f32 1.0, %v2521_v34 }
 0x1db   : > { %v1612_v14 = vpop.f32.mrf.mxu3  ;;  %v1524_v42 = vadd.f32 %v1523_v46, %v1435_v38  ;;  %v1347_v49 = vpop.f32.mrf.mxu0 }
 0x1dc   : > { %v1436_v20 = vpop.f32.mrf.mxu1  ;;  %2435 = vst [vmem:[%s3404_s9 + $0x8] sm:$0xff] %v2363_v13   ;;  %v1348_v45 = vadd.f32 %v3358_v32, %v1347_v49  ;;  %2524 = vrcp.f32 %v1745_v26 }
 0x1dd   : > { %v3422_v27 = vadd.f32 %v1612_v14, %v1524_v42 }
 0x1de   : > { %v1437_v53 = vadd.f32 %v1436_v20, %v1348_v45 }
 0x1df   : > { %v2523_v1 = vpop.eup %2522  ;;  %v1689_v36 = vmul.f32 1.442695, %v3422_v27 }
 0x1e0   : > { %v1746_v54 = vadd.f32 1.0, %v2523_v1 }
 0x1e2   : > { %2526 = vrcp.f32 %v1746_v54  ;;  %v1525_v39 = vpop.f32.mrf.mxu2  ;;  %v2525_v25 = vpop.eup %2524 }
 0x1e3   : > { %v1614_v40 = vpop.f32.mrf.mxu3  ;;  %2528 = vpow2.f32 %v1689_v36  ;;  %v1526_v23 = vadd.f32 %v1525_v39, %v1437_v53  ;;  %v1350_v9 = vpop.f32.mrf.mxu0  ;;  %v1814_v58 = vsel %vm3389_vm3, %v2525_v25, %v3407_v50 }
 0x1e4   : > { %v1439_v8 = vpop.f32.mrf.mxu1  ;;  %v1351_v24 = vadd.f32 %v3358_v32, %v1350_v9 }
 0x1e5   : > { %v1615_v10 = vadd.f32 %v1614_v40, %v1526_v23 }
 0x1e6   : > { %1389 = vmatmul.bf16.gmra.mxu0 %v3289_v61  ;;  %1478 = vmatmul.bf16.gmra.mxu1 %v3291_v62  ;;  %v1440_v3 = vadd.f32 %v1439_v8, %v1351_v24 }
 0x1e7   : > { %v1691_v15 = vmul.f32 1.442695, %v1615_v10  ;;  %1567 = vmatmul.bf16.gmra.mxu2 %v3301_v55 }
 0x1e8   : > { %1656 = vmatmul.bf16.gmra.mxu3 %v3303_v56  ;;  %v2527_v28 = vpop.eup %2526 }
 0x1e9   : > { %v2529_v57 = vpop.eup %2528  ;;  %v1815_v43 = vsel %vm3389_vm3, %v2527_v28, %v1610_v35  ;;  %2530 = vpow2.f32 %v1691_v15 }
 0x1ea   : > { %v2368_v61 = vpack.c.bf16 %v1815_v43, %v1814_v58  ;;  %v1528_v16 = vpop.f32.mrf.mxu2  ;;  %v1747_v55 = vadd.f32 1.0, %v2529_v57 }
 0x1eb   : > { %v1617_v62 = vpop.f32.mrf.mxu3  ;;  %v1529_v47 = vadd.f32 %v1528_v16, %v1440_v3  ;;  %v1352_v17 = vpop.f32.mrf.mxu0 }
 0x1ec   : > { %v1441_v48 = vpop.f32.mrf.mxu1  ;;  %2436 = vst [vmem:[%s3404_s9 + $0x10] sm:$0xff] %v2368_v61   ;;  %v1353_v18 = vadd.f32 %v3358_v32, %v1352_v17  ;;  %2532 = vrcp.f32 %v1747_v55 }
 0x1ed   : > { %v3437_v56 = vadd.f32 %v1617_v62, %v1529_v47 }
 0x1ee   : > { %v1442_v6 = vadd.f32 %v1441_v48, %v1353_v18 }
 0x1ef   : > { %v2531_v29 = vpop.eup %2530  ;;  %v1693_v50 = vmul.f32 1.442695, %v3437_v56 }
 0x1f0   : > { %v1748_v5 = vadd.f32 1.0, %v2531_v29 }
 0x1f2   : > { %2534 = vrcp.f32 %v1748_v5  ;;  %v1530_v33 = vpop.f32.mrf.mxu2  ;;  %v2533_v21 = vpop.eup %2532 }
 0x1f3   : > { %v1619_v35 = vpop.f32.mrf.mxu3  ;;  %2536 = vpow2.f32 %v1693_v50  ;;  %v1531_v59 = vadd.f32 %v1530_v33, %v1442_v6  ;;  %v1355_v60 = vpop.f32.mrf.mxu0  ;;  %v1816_v46 = vsel %vm3389_vm3, %v2533_v21, %v3422_v27 }
 0x1f4   : > { %v1444_v7 = vpop.f32.mrf.mxu1  ;;  %v1356_v34 = vadd.f32 %v3358_v32, %v1355_v60 }
 0x1f5   : > { %v1620_v12 = vadd.f32 %v1619_v35, %v1531_v59 }
 0x1f6   : > { %1394 = vmatmul.bf16.gmra.mxu0 %v3309_v51  ;;  %1483 = vmatmul.bf16.gmra.mxu1 %v3311_v52  ;;  %v1445_v42 = vadd.f32 %v1444_v7, %v1356_v34 }
 0x1f7   : > { %v1695_v22 = vmul.f32 1.442695, %v1620_v12  ;;  %1572 = vmatmul.bf16.gmra.mxu2 %v3321_v30 }
 0x1f8   : > { %1661 = vmatmul.bf16.gmra.mxu3 %v3323_v31  ;;  %v2535_v38 = vpop.eup %2534 }
 0x1f9   : > { %v2537_v13 = vpop.eup %2536  ;;  %v1817_v14 = vsel %vm3389_vm3, %v2535_v38, %v1615_v10  ;;  %2538 = vpow2.f32 %v1695_v22 }
 0x1fa   : > { %v2373_v51 = vpack.c.bf16 %v1817_v14, %v1816_v46  ;;  %v1533_v49 = vpop.f32.mrf.mxu2  ;;  %v1749_v30 = vadd.f32 1.0, %v2537_v13 }
 0x1fb   : > { %v1622_v52 = vpop.f32.mrf.mxu3  ;;  %v1534_v20 = vadd.f32 %v1533_v49, %v1445_v42  ;;  %v1357_v26 = vpop.f32.mrf.mxu0 }
 0x1fc   : > { %v1446_v45 = vpop.f32.mrf.mxu1  ;;  %2437 = vst [vmem:[%s3404_s9 + $0x18] sm:$0xff] %v2373_v51   ;;  %v1358_v1 = vadd.f32 %v3358_v32, %v1357_v26  ;;  %2540 = vrcp.f32 %v1749_v30 }
 0x1fd   : > { %v3452_v31 = vadd.f32 %v1622_v52, %v1534_v20 }
 0x1fe   : > { %v1447_v53 = vadd.f32 %v1446_v45, %v1358_v1 }
 0x1ff   : > { %v2539_v36 = vpop.eup %2538  ;;  %v1697_v27 = vmul.f32 1.442695, %v3452_v31 }
 0x200   : > { %v1750_v54 = vadd.f32 1.0, %v2539_v36 }
 0x202   : > { %2542 = vrcp.f32 %v1750_v54  ;;  %v1535_v39 = vpop.f32.mrf.mxu2  ;;  %v2541_v25 = vpop.eup %2540 }
 0x203   : > { %v1624_v40 = vpop.f32.mrf.mxu3  ;;  %2544 = vpow2.f32 %v1697_v27  ;;  %v1536_v23 = vadd.f32 %v1535_v39, %v1447_v53  ;;  %v1360_v9 = vpop.f32.mrf.mxu0  ;;  %v1818_v58 = vsel %vm3389_vm3, %v2541_v25, %v3437_v56 }
 0x204   : > { %v1449_v8 = vpop.f32.mrf.mxu1  ;;  %v1361_v24 = vadd.f32 %v3358_v32, %v1360_v9 }
 0x205   : > { %v1625_v10 = vadd.f32 %v1624_v40, %v1536_v23 }
 0x206   : > { %1399 = vmatmul.bf16.gmra.mxu0 %v3329_v37  ;;  %1488 = vmatmul.bf16.gmra.mxu1 %v3331_v41  ;;  %v1450_v3 = vadd.f32 %v1449_v8, %v1361_v24 }
 0x207   : > { %v1699_v15 = vmul.f32 1.442695, %v1625_v10  ;;  %1577 = vmatmul.bf16.gmra.mxu2 %v3341_v63 }
 0x208   : > { %1666 = vmatmul.bf16.gmra.mxu3 %v3343_v0  ;;  %v2543_v28 = vpop.eup %2542 }
 0x209   : > { %v2545_v57 = vpop.eup %2544  ;;  %v1819_v43 = vsel %vm3389_vm3, %v2543_v28, %v1620_v12  ;;  %2546 = vpow2.f32 %v1699_v15 }
 0x20a   : > { %v2378_v37 = vpack.c.bf16 %v1819_v43, %v1818_v58  ;;  %v1538_v61 = vpop.f32.mrf.mxu2  ;;  %v1751_v63 = vadd.f32 1.0, %v2545_v57 }
 0x20b   : > { %v1627_v41 = vpop.f32.mrf.mxu3  ;;  %v1539_v16 = vadd.f32 %v1538_v61, %v1450_v3  ;;  %v1362_v62 = vpop.f32.mrf.mxu0 }
 0x20c   : > { %v1451_v47 = vpop.f32.mrf.mxu1  ;;  %2438 = vst [vmem:[%s3404_s9 + $0x20] sm:$0xff] %v2378_v37   ;;  %v1363_v17 = vadd.f32 %v3358_v32, %v1362_v62  ;;  %2548 = vrcp.f32 %v1751_v63 }
 0x20d   : > { %v1628_v0 = vadd.f32 %v1627_v41, %v1539_v16 }
 0x20e   : > { %v1452_v18 = vadd.f32 %v1451_v47, %v1363_v17 }
 0x20f   : > { %v2547_v48 = vpop.eup %2546  ;;  %v1701_v55 = vmul.f32 1.442695, %v1628_v0 }
 0x210   : > { %v1752_v56 = vadd.f32 1.0, %v2547_v48 }
 0x212   : > { %2550 = vrcp.f32 %v1752_v56  ;;  %v1540_v29 = vpop.f32.mrf.mxu2  ;;  %v2549_v60 = vpop.eup %2548 }
 0x213   : > { %v1629_v50 = vpop.f32.mrf.mxu3  ;;  %2552 = vpow2.f32 %v1701_v55  ;;  %v1541_v5 = vadd.f32 %v1540_v29, %v1452_v18  ;;  %v1365_v6 = vpop.f32.mrf.mxu0  ;;  %v1820_v21 = vsel %vm3389_vm3, %v2549_v60, %v3452_v31 }
 0x214   : > { %v1454_v33 = vpop.f32.mrf.mxu1  ;;  %v1366_v59 = vadd.f32 %v3358_v32, %v1365_v6 }
 0x215   : > { %v1630_v35 = vadd.f32 %v1629_v50, %v1541_v5 }
 0x216   : > { %1404 = vmatmul.bf16.gmra.mxu0 %v3350_v11  ;;  %1493 = vmatmul.bf16.gmra.mxu1 %v3352_v4  ;;  %v1455_v38 = vadd.f32 %v1454_v33, %v1366_v59 }
 0x217   : > { %v1703_v7 = vmul.f32 1.442695, %v1630_v35  ;;  %1582 = vmatmul.bf16.gmra.mxu2 %v3367_v44 }
 0x218   : > { %1671 = vmatmul.bf16.gmra.mxu3 %v3369_v19  ;;  %v2551_v12 = vpop.eup %2550 }
 0x219   : > { %v2553_v34 = vpop.eup %2552  ;;  %v1821_v22 = vsel %vm3389_vm3, %v2551_v12, %v1625_v10  ;;  %2554 = vpow2.f32 %v1703_v7 }
 0x21a   : > { %v2383_v11 = vpack.c.bf16 %v1821_v22, %v1820_v21  ;;  %v1543_v13 = vpop.f32.mrf.mxu2  ;;  %v1753_v44 = vadd.f32 1.0, %v2553_v34 }
 0x21b   : > { %v1632_v4 = vpop.f32.mrf.mxu3  ;;  %v1544_v46 = vadd.f32 %v1543_v13, %v1455_v38  ;;  %v1367_v14 = vpop.f32.mrf.mxu0 }
 0x21c   : > { %v1456_v42 = vpop.f32.mrf.mxu1  ;;  %2439 = vst [vmem:[%s3404_s9 + $0x28] sm:$0xff] %v2383_v11   ;;  %v1368_v51 = vadd.f32 %v3358_v32, %v1367_v14  ;;  %2556 = vrcp.f32 %v1753_v44 }
 0x21d   : > { %v1633_v19 = vadd.f32 %v1632_v4, %v1544_v46 }
 0x21e   : > { %v1457_v26 = vadd.f32 %v1456_v42, %v1368_v51 }
 0x21f   : > { %v2555_v49 = vpop.eup %2554  ;;  %v1705_v52 = vmul.f32 1.442695, %v1633_v19 }
 0x220   : > { %v1754_v20 = vadd.f32 1.0, %v2555_v49 }
 0x222   : > { %2558 = vrcp.f32 %v1754_v20  ;;  %v1545_v45 = vpop.f32.mrf.mxu2  ;;  %v2557_v53 = vpop.eup %2556 }
 0x223   : > { %v1634_v30 = vpop.f32.mrf.mxu3  ;;  %2560 = vpow2.f32 %v1705_v52  ;;  %v1546_v31 = vadd.f32 %v1545_v45, %v1457_v26  ;;  %v1370_v1 = vpop.f32.mrf.mxu0  ;;  %v1822_v9 = vsel %vm3389_vm3, %v2557_v53, %v1628_v0 }
 0x224   : > { %v1459_v36 = vpop.f32.mrf.mxu1  ;;  %v1371_v54 = vadd.f32 %v3358_v32, %v1370_v1 }
 0x225   : > { %v1635_v27 = vadd.f32 %v1634_v30, %v1546_v31 }
 0x226   : > { %v1460_v10 = vadd.f32 %v1459_v36, %v1371_v54 }
 0x227   : > { %v1707_v39 = vmul.f32 1.442695, %v1635_v27 }
 0x228   : > { %v2559_v40 = vpop.eup %2558 }
 0x229   : > { %v2561_v23 = vpop.eup %2560  ;;  %v1823_v8 = vsel %vm3389_vm3, %v2559_v40, %v1630_v35  ;;  %2562 = vpow2.f32 %v1707_v39 }
 0x22a   : > { %v2388_v24 = vpack.c.bf16 %v1823_v8, %v1822_v9  ;;  %v1548_v25 = vpop.f32.mrf.mxu2  ;;  %v1755_v43 = vadd.f32 1.0, %v2561_v23 }
 0x22b   : > { %v1637_v15 = vpop.f32.mrf.mxu3  ;;  %v1549_v28 = vadd.f32 %v1548_v25, %v1460_v10  ;;  %v1372_v57 = vpop.f32.mrf.mxu0 }
 0x22c   : > { %v1461_v58 = vpop.f32.mrf.mxu1  ;;  %2440 = vst [vmem:[%s3404_s9 + $0x30] sm:$0xff] %v2388_v24   ;;  %v1373_v37 = vadd.f32 %v3358_v32, %v1372_v57  ;;  %2564 = vrcp.f32 %v1755_v43 }
 0x22d   : > { %v1638_v3 = vadd.f32 %v1637_v15, %v1549_v28 }
 0x22e   : > { %v1462_v62 = vadd.f32 %v1461_v58, %v1373_v37 }
 0x22f   : > { %v2563_v61 = vpop.eup %2562  ;;  %v1709_v41 = vmul.f32 1.442695, %v1638_v3 }
 0x230   : > { %v1756_v16 = vadd.f32 1.0, %v2563_v61 }
 0x232   : > { %2566 = vrcp.f32 %v1756_v16  ;;  %v1550_v47 = vpop.f32.mrf.mxu2  ;;  %v2565_v18 = vpop.eup %2564 }
 0x233   : > { %v1639_v63 = vpop.f32.mrf.mxu3  ;;  %2568 = vpow2.f32 %v1709_v41  ;;  %v1551_v0 = vadd.f32 %v1550_v47, %v1462_v62  ;;  %v1375_v17 = vpop.f32.mrf.mxu0  ;;  %v1824_v6 = vsel %vm3389_vm3, %v2565_v18, %v1633_v19 }
 0x234   : > { %v1464_v48 = vpop.f32.mrf.mxu1  ;;  %v1376_v56 = vadd.f32 %v3358_v32, %v1375_v17 }
 0x235   : > { %v1640_v55 = vadd.f32 %v1639_v63, %v1551_v0 }
 0x236   : > { %v1465_v35 = vadd.f32 %v1464_v48, %v1376_v56 }
 0x237   : > { %v1711_v29 = vmul.f32 1.442695, %v1640_v55 }
 0x238   : > { %v2567_v50 = vpop.eup %2566 }
 0x239   : > { %v2569_v5 = vpop.eup %2568  ;;  %v1825_v33 = vsel %vm3389_vm3, %v2567_v50, %v1635_v27  ;;  %2570 = vpow2.f32 %v1711_v29 }
 0x23a   : > { %v2393_v59 = vpack.c.bf16 %v1825_v33, %v1824_v6  ;;  %v1553_v60 = vpop.f32.mrf.mxu2  ;;  %v1757_v22 = vadd.f32 1.0, %v2569_v5 }
 0x23b   : > { %v1642_v7 = vpop.f32.mrf.mxu3  ;;  %v1554_v12 = vadd.f32 %v1553_v60, %v1465_v35  ;;  %v1377_v34 = vpop.f32.mrf.mxu0 }
 0x23c   : > { %v1466_v21 = vpop.f32.mrf.mxu1  ;;  %2441 = vst [vmem:[%s3404_s9 + $0x38] sm:$0xff] %v2393_v59   ;;  %v1378_v11 = vadd.f32 %v3358_v32, %v1377_v34  ;;  %2572 = vrcp.f32 %v1757_v22 }
 0x23d   : > { %v1643_v38 = vadd.f32 %v1642_v7, %v1554_v12 }
 0x23e   : > { %v1467_v14 = vadd.f32 %v1466_v21, %v1378_v11 }
 0x23f   : > { %v2571_v13 = vpop.eup %2570  ;;  %v1713_v4 = vmul.f32 1.442695, %v1643_v38 }
 0x240   : > { %v1758_v46 = vadd.f32 1.0, %v2571_v13 }
 0x242   : > { %2574 = vrcp.f32 %v1758_v46  ;;  %v1555_v42 = vpop.f32.mrf.mxu2  ;;  %v2573_v26 = vpop.eup %2572 }
 0x243   : > { %v1644_v44 = vpop.f32.mrf.mxu3  ;;  %2576 = vpow2.f32 %v1713_v4  ;;  %v1556_v19 = vadd.f32 %v1555_v42, %v1467_v14  ;;  %v1380_v51 = vpop.f32.mrf.mxu0  ;;  %v1826_v1 = vsel %vm3389_vm3, %v2573_v26, %v1638_v3 }
 0x244   : > { %v1469_v49 = vpop.f32.mrf.mxu1  ;;  %v1381_v20 = vadd.f32 %v3358_v32, %v1380_v51 }
 0x245   : > { %v1645_v52 = vadd.f32 %v1644_v44, %v1556_v19 }
 0x246   : > { %v1470_v27 = vadd.f32 %v1469_v49, %v1381_v20 }
 0x247   : > { %v1715_v45 = vmul.f32 1.442695, %v1645_v52 }
 0x248   : > { %v2575_v30 = vpop.eup %2574 }
 0x249   : > { %v2577_v31 = vpop.eup %2576  ;;  %v1827_v36 = vsel %vm3389_vm3, %v2575_v30, %v1640_v55  ;;  %2578 = vpow2.f32 %v1715_v45 }
 0x24a   : > { %v2398_v54 = vpack.c.bf16 %v1827_v36, %v1826_v1  ;;  %v1558_v53 = vpop.f32.mrf.mxu2  ;;  %v1759_v8 = vadd.f32 1.0, %v2577_v31 }
 0x24b   : > { %v1647_v39 = vpop.f32.mrf.mxu3  ;;  %v1559_v40 = vadd.f32 %v1558_v53, %v1470_v27  ;;  %v1382_v23 = vpop.f32.mrf.mxu0 }
 0x24c   : > { %v1471_v9 = vpop.f32.mrf.mxu1  ;;  %2442 = vst [vmem:[%s3404_s9 + $0x40] sm:$0xff] %v2398_v54   ;;  %v1383_v24 = vadd.f32 %v3358_v32, %v1382_v23  ;;  %2580 = vrcp.f32 %v1759_v8 }
 0x24d   : > { %v1648_v10 = vadd.f32 %v1647_v39, %v1559_v40 }
 0x24e   : > { %v1472_v57 = vadd.f32 %v1471_v9, %v1383_v24 }
 0x24f   : > { %v2579_v25 = vpop.eup %2578  ;;  %v1717_v15 = vmul.f32 1.442695, %v1648_v10 }
 0x250   : > { %v1760_v28 = vadd.f32 1.0, %v2579_v25 }
 0x252   : > { %2582 = vrcp.f32 %v1760_v28  ;;  %v1560_v58 = vpop.f32.mrf.mxu2  ;;  %v2581_v62 = vpop.eup %2580 }
 0x253   : > { %v1649_v43 = vpop.f32.mrf.mxu3  ;;  %2584 = vpow2.f32 %v1717_v15  ;;  %v1561_v3 = vadd.f32 %v1560_v58, %v1472_v57  ;;  %v1385_v37 = vpop.f32.mrf.mxu0  ;;  %v1828_v17 = vsel %vm3389_vm3, %v2581_v62, %v1643_v38 }
 0x254   : > { %v1474_v61 = vpop.f32.mrf.mxu1  ;;  %v1386_v16 = vadd.f32 %v3358_v32, %v1385_v37 }
 0x255   : > { %v1650_v41 = vadd.f32 %v1649_v43, %v1561_v3 }
 0x256   : > { %v1475_v55 = vadd.f32 %v1474_v61, %v1386_v16 }
 0x257   : > { %v1719_v47 = vmul.f32 1.442695, %v1650_v41 }
 0x258   : > { %v2583_v63 = vpop.eup %2582 }
 0x259   : > { %v2585_v0 = vpop.eup %2584  ;;  %v1829_v48 = vsel %vm3389_vm3, %v2583_v63, %v1645_v52  ;;  %2586 = vpow2.f32 %v1719_v47 }
 0x25a   : > { %v2403_v56 = vpack.c.bf16 %v1829_v48, %v1828_v17  ;;  %v1563_v18 = vpop.f32.mrf.mxu2  ;;  %v1761_v33 = vadd.f32 1.0, %v2585_v0 }
 0x25b   : > { %v1652_v29 = vpop.f32.mrf.mxu3  ;;  %v1564_v50 = vadd.f32 %v1563_v18, %v1475_v55  ;;  %v1387_v5 = vpop.f32.mrf.mxu0 }
 0x25c   : > { %v1476_v6 = vpop.f32.mrf.mxu1  ;;  %2443 = vst [vmem:[%s3404_s9 + $0x48] sm:$0xff] %v2403_v56   ;;  %v1388_v59 = vadd.f32 %v3358_v32, %v1387_v5  ;;  %2588 = vrcp.f32 %v1761_v33 }
 0x25d   : > { %v1653_v35 = vadd.f32 %v1652_v29, %v1564_v50 }
 0x25e   : > { %v1477_v34 = vadd.f32 %v1476_v6, %v1388_v59 }
 0x25f   : > { %v2587_v60 = vpop.eup %2586  ;;  %v1721_v7 = vmul.f32 1.442695, %v1653_v35 }
 0x260   : > { %v1762_v12 = vadd.f32 1.0, %v2587_v60 }
 0x262   : > { %2590 = vrcp.f32 %v1762_v12  ;;  %v1565_v21 = vpop.f32.mrf.mxu2  ;;  %v2589_v14 = vpop.eup %2588 }
 0x263   : > { %v1654_v22 = vpop.f32.mrf.mxu3  ;;  %2592 = vpow2.f32 %v1721_v7  ;;  %v1566_v38 = vadd.f32 %v1565_v21, %v1477_v34  ;;  %v1390_v11 = vpop.f32.mrf.mxu0  ;;  %v1830_v51 = vsel %vm3389_vm3, %v2589_v14, %v1648_v10 }
 0x264   : > { %v1479_v13 = vpop.f32.mrf.mxu1  ;;  %v1391_v46 = vadd.f32 %v3358_v32, %v1390_v11 }
 0x265   : > { %v1655_v4 = vadd.f32 %v1654_v22, %v1566_v38 }
 0x266   : > { %v1480_v52 = vadd.f32 %v1479_v13, %v1391_v46 }
 0x267   : > { %v1723_v42 = vmul.f32 1.442695, %v1655_v4 }
 0x268   : > { %v2591_v44 = vpop.eup %2590 }
 0x269   : > { %v2593_v19 = vpop.eup %2592  ;;  %v1831_v49 = vsel %vm3389_vm3, %v2591_v44, %v1650_v41  ;;  %2594 = vpow2.f32 %v1723_v42 }
 0x26a   : > { %v2408_v20 = vpack.c.bf16 %v1831_v49, %v1830_v51  ;;  %v1568_v26 = vpop.f32.mrf.mxu2  ;;  %v1763_v36 = vadd.f32 1.0, %v2593_v19 }
 0x26b   : > { %v1657_v45 = vpop.f32.mrf.mxu3  ;;  %v1569_v30 = vadd.f32 %v1568_v26, %v1480_v52  ;;  %v1392_v31 = vpop.f32.mrf.mxu0 }
 0x26c   : > { %v1481_v1 = vpop.f32.mrf.mxu1  ;;  %2444 = vst [vmem:[%s3404_s9 + $0x50] sm:$0xff] %v2408_v20   ;;  %v1393_v54 = vadd.f32 %v3358_v32, %v1392_v31  ;;  %2596 = vrcp.f32 %v1763_v36 }
 0x26d   : > { %v1658_v27 = vadd.f32 %v1657_v45, %v1569_v30 }
 0x26e   : > { %v1482_v23 = vadd.f32 %v1481_v1, %v1393_v54 }
 0x26f   : > { %v2595_v53 = vpop.eup %2594  ;;  %v1725_v39 = vmul.f32 1.442695, %v1658_v27 }
 0x270   : > { %v1764_v40 = vadd.f32 1.0, %v2595_v53 }
 0x272   : > { %2598 = vrcp.f32 %v1764_v40  ;;  %v1570_v9 = vpop.f32.mrf.mxu2  ;;  %v2597_v57 = vpop.eup %2596 }
 0x273   : > { %v1659_v8 = vpop.f32.mrf.mxu3  ;;  %2600 = vpow2.f32 %v1725_v39  ;;  %v1571_v10 = vadd.f32 %v1570_v9, %v1482_v23  ;;  %v1395_v24 = vpop.f32.mrf.mxu0  ;;  %v1832_v37 = vsel %vm3389_vm3, %v2597_v57, %v1653_v35  ;;  %v2632_v39 = vld [vmem:[%s3585_s4] ss:$0 sm:$0xff] }
 0x274   : > { %v1484_v25 = vpop.f32.mrf.mxu1  ;;  %v1396_v28 = vadd.f32 %v3358_v32, %v1395_v24 }
 0x275   : > { %v1660_v15 = vadd.f32 %v1659_v8, %v1571_v10 }
 0x276   : > { %v1485_v41 = vadd.f32 %v1484_v25, %v1396_v28 }
 0x277   : > { %v1727_v58 = vmul.f32 1.442695, %v1660_v15 }
 0x278   : > { %v2599_v43 = vpop.eup %2598 }
 0x279   : > { %v2601_v3 = vpop.eup %2600  ;;  %v1833_v61 = vsel %vm3389_vm3, %v2599_v43, %v1655_v4  ;;  %2602 = vpow2.f32 %v1727_v58 }
 0x27a   : > { %v2413_v16 = vpack.c.bf16 %v1833_v61, %v1832_v37  ;;  %v1573_v62 = vpop.f32.mrf.mxu2  ;;  %v1765_v48 = vadd.f32 1.0, %v2601_v3 }
 0x27b   : > { %v1662_v47 = vpop.f32.mrf.mxu3  ;;  %v1574_v63 = vadd.f32 %v1573_v62, %v1485_v41  ;;  %v1397_v0 = vpop.f32.mrf.mxu0 }
 0x27c   : > { %v1486_v17 = vpop.f32.mrf.mxu1  ;;  %2445 = vst [vmem:[%s3404_s9 + $0x58] sm:$0xff] %v2413_v16   ;;  %v1398_v56 = vadd.f32 %v3358_v32, %v1397_v0  ;;  %2604 = vrcp.f32 %v1765_v48 }
 0x27d   : > { %v1663_v55 = vadd.f32 %v1662_v47, %v1574_v63 }
 0x27e   : > { %v1487_v5 = vadd.f32 %v1486_v17, %v1398_v56 }
 0x27f   : > { %v2603_v18 = vpop.eup %2602  ;;  %v1729_v29 = vmul.f32 1.442695, %v1663_v55 }
 0x280   : > { %v1766_v50 = vadd.f32 1.0, %v2603_v18 }
 0x282   : > { %2606 = vrcp.f32 %v1766_v50  ;;  %v1575_v6 = vpop.f32.mrf.mxu2  ;;  %v2605_v34 = vpop.eup %2604 }
 0x283   : > { %v1664_v33 = vpop.f32.mrf.mxu3  ;;  %2608 = vpow2.f32 %v1729_v29  ;;  %v1576_v35 = vadd.f32 %v1575_v6, %v1487_v5  ;;  %v1400_v59 = vpop.f32.mrf.mxu0  ;;  %v1834_v11 = vsel %vm3389_vm3, %v2605_v34, %v1658_v27 }
 0x284   : > { %v1489_v60 = vpop.f32.mrf.mxu1  ;;  %v1401_v12 = vadd.f32 %v3358_v32, %v1400_v59 }
 0x285   : > { %v1665_v7 = vadd.f32 %v1664_v33, %v1576_v35 }
 0x286   : > { %v1490_v4 = vadd.f32 %v1489_v60, %v1401_v12 }
 0x287   : > { %v1731_v21 = vmul.f32 1.442695, %v1665_v7 }
 0x288   : > { %v2607_v22 = vpop.eup %2606 }
 0x289   : > { %v2609_v38 = vpop.eup %2608  ;;  %v1835_v13 = vsel %vm3389_vm3, %v2607_v22, %v1660_v15  ;;  %2610 = vpow2.f32 %v1731_v21 }
 0x28a   : > { %v2418_v46 = vpack.c.bf16 %v1835_v13, %v1834_v11  ;;  %v1578_v14 = vpop.f32.mrf.mxu2  ;;  %v1767_v51 = vadd.f32 1.0, %v2609_v38 }
 0x28b   : > { %v1667_v42 = vpop.f32.mrf.mxu3  ;;  %v1579_v44 = vadd.f32 %v1578_v14, %v1490_v4  ;;  %v1402_v19 = vpop.f32.mrf.mxu0 }
 0x28c   : > { %2446 = vst [vmem:[%s3404_s9 + $0x60] sm:$0xff] %v2418_v46   ;;  %v1491_v49 = vpop.f32.mrf.mxu1  ;;  %v1403_v20 = vadd.f32 %v3358_v32, %v1402_v19  ;;  %2612 = vrcp.f32 %v1767_v51 }
 0x28d   : > { %v1668_v52 = vadd.f32 %v1667_v42, %v1579_v44 }
 0x28e   : > { %v1492_v31 = vadd.f32 %v1491_v49, %v1403_v20 }
 0x28f   : > { %v2611_v26 = vpop.eup %2610  ;;  %v1733_v45 = vmul.f32 1.442695, %v1668_v52 }
 0x290   : > { %v1768_v30 = vadd.f32 1.0, %v2611_v26 }
 0x292   : > { %2614 = vrcp.f32 %v1768_v30  ;;  %v1580_v1 = vpop.f32.mrf.mxu2  ;;  %v2613_v23 = vpop.eup %2612 }
 0x293   : > { %v1669_v36 = vpop.f32.mrf.mxu3  ;;  %2616 = vpow2.f32 %v1733_v45  ;;  %v1581_v27 = vadd.f32 %v1580_v1, %v1492_v31  ;;  %v1405_v54 = vpop.f32.mrf.mxu0  ;;  %v1836_v24 = vsel %vm3389_vm3, %v2613_v23, %v1663_v55 }
 0x294   : > { %v1406_v40 = vadd.f32 %v2632_v39, %v1405_v54  ;;  %v1494_v32 = vpop.f32.mrf.mxu1 }
 0x295   : > { %v1670_v53 = vadd.f32 %v1669_v36, %v1581_v27 }
 0x296   : > { %v1495_v15 = vadd.f32 %v1494_v32, %v1406_v40 }
 0x297   : > { %v1735_v9 = vmul.f32 1.442695, %v1670_v53 }
 0x298   : > { %v2615_v8 = vpop.eup %2614 }
 0x299   : > { %v2617_v10 = vpop.eup %2616  ;;  %v1837_v25 = vsel %vm3389_vm3, %v2615_v8, %v1665_v7  ;;  %2618 = vpow2.f32 %v1735_v9 }
 0x29a   : > { %v2423_v28 = vpack.c.bf16 %v1837_v25, %v1836_v24  ;;  %v1583_v57 = vpop.f32.mrf.mxu2  ;;  %v1769_v37 = vadd.f32 1.0, %v2617_v10 }
 0x29b   : > { %v1672_v58 = vpop.f32.mrf.mxu3  ;;  %v1584_v43 = vadd.f32 %v1583_v57, %v1495_v15  ;;  %v1407_v3 = vpop.f32.mrf.mxu0 }
 0x29c   : > { %2447 = vst [vmem:[%s3404_s9 + $0x68] sm:$0xff] %v2423_v28   ;;  %v1408_v41 = vadd.f32 %v2632_v39, %v1407_v3  ;;  %2620 = vrcp.f32 %v1769_v37  ;;  %v1496_v63 = vpop.f32.mrf.mxu1 }
 0x29d   : > { %v1673_v61 = vadd.f32 %v1672_v58, %v1584_v43 }
 0x29e   : > { %v1497_v0 = vadd.f32 %v1496_v63, %v1408_v41 }
 0x29f   : > { %v2619_v16 = vpop.eup %2618  ;;  %v1737_v62 = vmul.f32 1.442695, %v1673_v61 }
 0x2a0   : > { %v1770_v47 = vadd.f32 1.0, %v2619_v16 }
 0x2a2   : > { %2622 = vrcp.f32 %v1770_v47  ;;  %v1585_v17 = vpop.f32.mrf.mxu2  ;;  %v2621_v18 = vpop.eup %2620 }
 0x2a3   : > { %2624 = vpow2.f32 %v1737_v62  ;;  %v1586_v48 = vadd.f32 %v1585_v17, %v1497_v0  ;;  %v1674_v55 = vpop.f32.mrf.mxu3  ;;  %v1838_v6 = vsel %vm3389_vm3, %v2621_v18, %v1668_v52 }
 0x2a5   : > { %v1675_v56 = vadd.f32 %v1674_v55, %v1586_v48 }
 0x2a7   : > { %v1739_v29 = vmul.f32 1.442695, %v1675_v56 }
 0x2a8   : > { %v2623_v50 = vpop.eup %2622 }
 0x2a9   : > { %v2625_v5 = vpop.eup %2624  ;;  %v1839_v33 = vsel %vm3389_vm3, %v2623_v50, %v1670_v53  ;;  %2626 = vpow2.f32 %v1739_v29 }
 0x2aa   : > { %v2428_v35 = vpack.c.bf16 %v1839_v33, %v1838_v6  ;;  %v1771_v59 = vadd.f32 1.0, %v2625_v5 }
 0x2ac   : > { %2448 = vst [vmem:[%s3404_s9 + $0x70] sm:$0xff] %v2428_v35   ;;  %2628 = vrcp.f32 %v1771_v59 }
 0x2af   : > { %v2627_v60 = vpop.eup %2626 }
 0x2b0   : > { %v1772_v7 = vadd.f32 1.0, %v2627_v60 }
 0x2b2   : > { %2630 = vrcp.f32 %v1772_v7  ;;  %v2629_v12 = vpop.eup %2628 }
 0x2b3   : > { %v1840_v21 = vsel %vm3389_vm3, %v2629_v12, %v1673_v61 }
 0x2b8   : > { %v2631_v34 = vpop.eup %2630 }
 0x2b9   : > { %v1841_v22 = vsel %vm3389_vm3, %v2631_v34, %v1675_v56 }
 0x2ba   : > { %v2433_v38 = vpack.c.bf16 %v1841_v22, %v1840_v21 }
 0x2bc   : > { %2449 = vst [vmem:[%s3404_s9 + $0x78] sm:$0xff] %v2433_v38  }
 0x2bd   : > { %2690 = shalt.err (!%p2687_p8)
}
 0x2be   : > { %s2733_s28 = smov 64   ;;  %s2734_s9 = smov 4  }
 0x2bf   : > { %2454 = dma.vmem_to_hbm [thread:$0]  (%p2808_p5), %s1920_s18, 2048, %s1922_s19, %s1907_s25, %s2733_s28, %s2733_s28, %s2734_s9  }
 0x2c0 PF: > { %p2466_p9 = scmp.ge.s32.totalorder %s2729_s24, 2  ;;  %s1936_s15 = sand.u32 1, %s2717_s21  }
 0x2c1   : > { %s1937_s16 = scalar_lea.sflag [#allocation4], %s1936_s15 }
 0x2c2   : > { %p2461_p10 = pnand %p2466_p9, %p2812_p6 }
 0x2c4   : > { %p2462_p11 = pneg %p2461_p10 }
 0x2c6   : > { %2712 = dma.done.wait (%p2462_p11), %s1937_s16, 2048  }
 0x2c7   : > { %2714 = vsyncadd (%p2462_p11), %s1937_s16, 4294965248  ;;  %p17_p12 = scmp.ge.s32.totalorder %s2795_s27, 4   ;;  %s3592_s21 = smov %s2721_s22 }
 0x2c8   : > { %s3593_s22 = smov %s2725_s23  ;;  %s3594_s23 = smov %s2806_s30 }
 0x2c9   : > { %s3595_s24 = smov %s2795_s27  ;;  %19 = sbr.rel (!%p17_p12) target bundleno = 4 (0x4), region = 84 }
 0x2ce   :  { %1943 = vsyncpa [#allocation3], 1 }
 0x2cf   :  { %1945 = vsyncpa [#allocation3 + $0x1], 1 }
 0x2d0   :  { %1946 = vsyncpa [#allocation4], 1 }
 0x2d1   :  { %1948 = vsyncpa [#allocation4 + $0x1], 1 }

</bundles_post_ra>
